<compile_context>
chip_gen: v7x
topology: tpu7x:2x2x1
jax: 0.10.0
libtpu: 0.0.40
codegen_flags: <defaults>
</compile_context>

<pallas_src>
import math

import jax
import jax.numpy as jnp
from jax.experimental import pallas as pl
from jax.experimental.pallas import tpu as pltpu

_LANE = 128
_SUBLANE = 8


def _round_up(n, m):
    return ((n + m - 1) // m) * m


def _cdiv(a, b):
    return (a + b - 1) // b


def _compute_hidden_sizes(input_size, output_size, num_hidden_layers):
    # mirrors Dense_Layers._compute_hidden_sizes
    r = (output_size / input_size) ** (1.0 / num_hidden_layers)
    return [int(input_size * r ** (i + 1)) for i in range(num_hidden_layers)]


def _make_vae_kernel(n_enc_hidden, n_dec, L_pad, neg_slope=0.01):
    """Fused kernel: encoder MLP -> merged (mu|log_var) head -> reparameterize -> decoder.

    Input ref order: x, eps, bias_buf, [padded weight]*(n_enc_hidden + 1 + n_dec).
    bias_buf is a single f32 buffer; row `li` holds layer li's bias (zero-padded).
    Output refs: x_recon, mu, log_var (lane-dense, padded widths).
    """
    n_layers = n_enc_hidden + 1 + n_dec

    def kernel(*refs):
        idx = 0
        x_ref = refs[idx]; idx += 1
        eps_ref = refs[idx]; idx += 1
        bias_ref = refs[idx]; idx += 1
        w_refs = refs[idx:idx + n_layers]; idx += n_layers
        xr_ref, mu_ref, lv_ref = refs[idx], refs[idx + 1], refs[idx + 2]

        def dense(h, li):
            w_ref = w_refs[li]
            out_pad = w_ref.shape[1]                       # static per layer
            b = bias_ref[li:li + 1, :out_pad]              # f32 bias row (1, out_pad)
            return jnp.dot(h.astype(w_ref.dtype), w_ref[...],
                           preferred_element_type=jnp.float32) + b

        def leaky(v):  # nn.LeakyReLU() default negative_slope = 0.01
            return jnp.where(v > 0, v, neg_slope * v)

        # ---- encoder hidden layers ----
        h = x_ref[...].astype(jnp.float32)
        li = 0
        for _ in range(n_enc_hidden):
            h = leaky(dense(h, li)); li += 1
            # TODO(synk): train-mode nn.Dropout not implemented; eval-mode identity used.

        # ---- merged encoder head: mu | log_var, both slices land on 128-lane edges ----
        enc_out = dense(h, li); li += 1
        mu = enc_out[:, :L_pad]
        log_var = enc_out[:, L_pad:]

        # ---- reparameterize: z = mu + eps * exp(0.5 * log_var) ----
        # NOTE: padded log_var lanes are 0 -> exp(0)=1; padded z lanes stay 0 only
        # because the wrapper zero-pads eps.  Do not change that invariant.
        z = mu + eps_ref[...].astype(jnp.float32) * jnp.exp(0.5 * log_var)

        # ---- decoder ----
        h = z
        for i in range(n_dec):
            h = dense(h, li); li += 1
            if i < n_dec - 1:
                h = leaky(h)

        xr_ref[...] = h.astype(xr_ref.dtype)
        mu_ref[...] = mu.astype(mu_ref.dtype)
        lv_ref[...] = log_var.astype(lv_ref.dtype)

    return kernel


def _pad_weight(w, compute_dtype):
    """Zero-pad a (fan_in, fan_out) weight to 128-multiples in both dims."""
    fan_in, fan_out = w.shape
    wp = jnp.zeros((_round_up(fan_in, _LANE), _round_up(fan_out, _LANE)), compute_dtype)
    return wp.at[:fan_in, :fan_out].set(w.astype(compute_dtype))


def vae_forward_pallas(x, eps, enc_params, dec_params, latent_size, *,
                       max_bm=512, min_tiles=1,
                       compute_dtype=jnp.float32, recon_dtype=jnp.float32):
    """Fused VAE forward.

    enc_params / dec_params: lists of (w, b) with w (fan_in, fan_out), b (fan_out,).
    min_tiles: set to 2 on v7x (2 TensorCores/chip) so the batch grid can shard
    across both cores even when B <= max_bm.
    Returns (x_recon, mu, log_var) of shapes (B, D), (B, latent), (B, latent).
    """
    B, D = x.shape
    assert eps.shape == (B, latent_size)

    # Final encoder layer produces [mu | log_var]; keep it as one merged head.
    w_last, b_last = enc_params[-1]
    assert w_last.shape[1] == 2 * latent_size
    enc_hidden_params = enc_params[:-1]
    n_enc_hidden = len(enc_hidden_params)
    n_dec = len(dec_params)
    n_layers = n_enc_hidden + 1 + n_dec

    D_pad = _round_up(D, _LANE)
    L_pad = _round_up(latent_size, _LANE)

    # ---- balanced batch tiling ----
    n_tiles = max(_cdiv(B, max_bm), min_tiles)
    n_tiles = min(n_tiles, max(_cdiv(B, _SUBLANE), 1))      # no empty tiles
    bm0 = _round_up(_cdiv(B, n_tiles), _SUBLANE)
    # Prefer MXU-friendly 256/128 row counts, but only when they do not add padding.
    bm, B_pad = None, None
    for align in (256, 128, _SUBLANE):
        bm_c = _round_up(bm0, align)
        b_pad_c = _round_up(B, bm_c)
        if B_pad is None or b_pad_c < B_pad:
            bm, B_pad = bm_c, b_pad_c

    # ---- pad inputs (x and eps kept in f32; matmul operands are cast in-kernel) ----
    x_p = jnp.zeros((B_pad, D_pad), jnp.float32).at[:B, :D].set(x.astype(jnp.float32))
    eps_p = jnp.zeros((B_pad, L_pad), jnp.float32).at[:B, :latent_size].set(
        eps.astype(jnp.float32))

    # ---- pack weights (compute_dtype) ----
    w_padded = [_pad_weight(w, compute_dtype) for (w, _) in enc_hidden_params]
    fan_in_head = w_last.shape[0]
    head = jnp.zeros((_round_up(fan_in_head, _LANE), 2 * L_pad), compute_dtype)
    head = head.at[:fan_in_head, :latent_size].set(
        w_last[:, :latent_size].astype(compute_dtype))
    head = head.at[:fan_in_head, L_pad:L_pad + latent_size].set(
        w_last[:, latent_size:].astype(compute_dtype))
    w_padded.append(head)
    w_padded += [_pad_weight(w, compute_dtype) for (w, _) in dec_params]

    # ---- single shared f32 bias buffer (one extra ref, full precision bias) ----
    max_out_pad = max(wp.shape[1] for wp in w_padded)
    bias_buf = jnp.zeros((_round_up(n_layers, _SUBLANE), max_out_pad), jnp.float32)
    li = 0
    for (_, b) in enc_hidden_params:
        bias_buf = bias_buf.at[li, :b.shape[0]].set(b.astype(jnp.float32)); li += 1
    bias_buf = bias_buf.at[li, :latent_size].set(b_last[:latent_size].astype(jnp.float32))
    bias_buf = bias_buf.at[li, L_pad:L_pad + latent_size].set(
        b_last[latent_size:].astype(jnp.float32))
    li += 1
    for (_, b) in dec_params:
        bias_buf = bias_buf.at[li, :b.shape[0]].set(b.astype(jnp.float32)); li += 1

    # ---- VMEM budget ----
    def nbytes(a):
        return a.size * a.dtype.itemsize

    weight_bytes = sum(nbytes(wp) for wp in w_padded) + nbytes(bias_buf)
    act_in_bytes = 2 * (bm * D_pad + bm * L_pad) * 4                 # x + eps, dbl-buf
    out_bytes = 2 * (bm * D_pad * jnp.dtype(recon_dtype).itemsize + 2 * bm * L_pad * 4)
    interm_bytes = bm * sum(wp.shape[1] for wp in w_padded) * 4      # layer activations
    try:
        vmem_cap = int(pltpu.get_tpu_info().vmem_capacity_bytes) * 7 // 8
    except Exception:
        vmem_cap = 56 << 20   # safe for v7x's 64 MiB per-TC VMEM (and v5e/v6e)

    kernel = _make_vae_kernel(n_enc_hidden, n_dec, L_pad)

    def batch_spec(feat):
        return pl.BlockSpec((bm, feat), lambda i: (i, 0))

    out_specs = [batch_spec(D_pad), batch_spec(L_pad), batch_spec(L_pad)]
    out_shape = [
        jax.ShapeDtypeStruct((B_pad, D_pad), recon_dtype),
        jax.ShapeDtypeStruct((B_pad, L_pad), jnp.float32),
        jax.ShapeDtypeStruct((B_pad, L_pad), jnp.float32),
    ]

    def run(single_buffer_weights):
        if single_buffer_weights:
            # Constant index_map -> never needs the default double-buffer.
            def const_spec(arr):
                return pl.BlockSpec(arr.shape, lambda i: (0, 0),
                                    pipeline_mode=pl.Buffered(1))
            wb_factor = 1
        else:
            def const_spec(arr):
                return pl.BlockSpec(arr.shape, lambda i: (0, 0))
            wb_factor = 2
        vmem_limit = int(1.25 * (wb_factor * weight_bytes + act_in_bytes
                                 + out_bytes + interm_bytes)) + (4 << 20)
        vmem_limit = min(max(vmem_limit, 32 << 20), vmem_cap)
        in_specs = ([batch_spec(D_pad), batch_spec(L_pad), const_spec(bias_buf)]
                    + [const_spec(wp) for wp in w_padded])
        return pl.pallas_call(
            kernel,
            grid=(B_pad // bm,),
            in_specs=in_specs,
            out_specs=out_specs,
            out_shape=out_shape,
            compiler_params=pltpu.CompilerParams(
                dimension_semantics=("parallel",),
                vmem_limit_bytes=vmem_limit),
        )(x_p, eps_p, bias_buf, *w_padded)

    try:
        xr_p, mu_p, lv_p = run(True)
    except Exception:
        # Fallback if this jax/mosaic version rejects Buffered(1) on weight specs.
        xr_p, mu_p, lv_p = run(False)

    # TODO(synk): models whose full weight set exceeds the VMEM budget would need a
    # weight-streaming path (extra "arbitrary" grid axis or emit_pipeline); the fused
    # fully-resident design here assumes the weights fit.
    return xr_p[:B, :D], mu_p[:B, :latent_size], lv_p[:B, :latent_size]


def init_linear(key, fan_in, fan_out):
    """Deterministic init mimicking nn.Linear's default U(-1/sqrt(fan_in), ...)."""
    kw, kb = jax.random.split(key)
    bound = 1.0 / math.sqrt(fan_in)
    w = jax.random.uniform(kw, (fan_in, fan_out), jnp.float32, -bound, bound)
    b = jax.random.uniform(kb, (fan_out,), jnp.float32, -bound, bound)
    return w, b


if __name__ == "__main__":
    # Small shapes consistent with the module's constructor.
    input_size = 32
    latent_size = 8
    num_hidden_layers = 1
    B = 16

    # Encoder: input_size -> hidden -> 2*latent_size
    enc_hidden = _compute_hidden_sizes(input_size, 2 * latent_size, num_hidden_layers)
    enc_dims = [input_size] + enc_hidden + [2 * latent_size]
    # Decoder: latent_size -> reversed(enc_hidden) -> input_size
    dec_hidden = enc_hidden[::-1]
    dec_dims = [latent_size] + dec_hidden + [input_size]

    key = jax.random.PRNGKey(0)
    n_lin = (len(enc_dims) - 1) + (len(dec_dims) - 1)
    keys = jax.random.split(key, n_lin + 2)
    ki = iter(keys)

    enc_params = [init_linear(next(ki), enc_dims[i], enc_dims[i + 1])
                  for i in range(len(enc_dims) - 1)]
    dec_params = [init_linear(next(ki), dec_dims[i], dec_dims[i + 1])
                  for i in range(len(dec_dims) - 1)]

    x = jax.random.normal(next(ki), (B, input_size), jnp.float32)
    eps = jax.random.normal(next(ki), (B, latent_size), jnp.float32)  # torch.randn_like(std)

    x_recon, mu, log_var = vae_forward_pallas(x, eps, enc_params, dec_params, latent_size)
    jax.block_until_ready((x_recon, mu, log_var))

    # Pure-JAX reference for correctness.
    def ref_forward(xv):
        def leaky(v):
            return jnp.where(v > 0, v, 0.01 * v)
        h = xv
        for i, (w, b) in enumerate(enc_params):
            h = h @ w + b
            if i < len(enc_params) - 1:
                h = leaky(h)
        mu_r, lv_r = h[:, :latent_size], h[:, latent_size:]
        z = mu_r + eps * jnp.exp(0.5 * lv_r)
        h = z
        for i, (w, b) in enumerate(dec_params):
            h = h @ w + b
            if i < len(dec_params) - 1:
                h = leaky(h)
        return h, mu_r, lv_r

    xr_ref, mu_ref, lv_ref = ref_forward(x)
    assert jnp.allclose(x_recon, xr_ref, atol=1e-4, rtol=1e-4), "x_recon mismatch"
    assert jnp.allclose(mu, mu_ref, atol=1e-4, rtol=1e-4), "mu mismatch"
    assert jnp.allclose(log_var, lv_ref, atol=1e-4, rtol=1e-4), "log_var mismatch"

    print("KERNEL_OK")
</pallas_src>

<mosaic_0001>
module attributes {stable_mosaic.version = 11 : i64} {
  func.func @kernel(%arg0: i32, %arg1: memref<16x128xf32, #tpu.memory_space<vmem>>, %arg2: memref<16x128xf32, #tpu.memory_space<vmem>>, %arg3: memref<8x256xf32, #tpu.memory_space<vmem>>, %arg4: memref<128x128xf32, #tpu.memory_space<vmem>>, %arg5: memref<128x256xf32, #tpu.memory_space<vmem>>, %arg6: memref<128x128xf32, #tpu.memory_space<vmem>>, %arg7: memref<128x128xf32, #tpu.memory_space<vmem>>, %arg8: memref<16x128xf32, #tpu.memory_space<vmem>>, %arg9: memref<16x128xf32, #tpu.memory_space<vmem>>, %arg10: memref<16x128xf32, #tpu.memory_space<vmem>>) attributes {dimension_semantics = [#tpu.dimension_semantics<parallel>], iteration_bounds = array<i64: 1>, scalar_prefetch = 0 : i64, scratch_operands = 0 : i64, tpu.core_type = #tpu.core_type<tc>, window_params = [{transform_indices = @transform_0, window_bounds = array<i64: 16, 128>}, {transform_indices = @transform_1, window_bounds = array<i64: 16, 128>}, {pipeline_mode = #tpu.pipeline_mode<synchronous>, transform_indices = @transform_2, window_bounds = array<i64: 8, 256>}, {pipeline_mode = #tpu.pipeline_mode<synchronous>, transform_indices = @transform_3, window_bounds = array<i64: 128, 128>}, {pipeline_mode = #tpu.pipeline_mode<synchronous>, transform_indices = @transform_4, window_bounds = array<i64: 128, 256>}, {pipeline_mode = #tpu.pipeline_mode<synchronous>, transform_indices = @transform_5, window_bounds = array<i64: 128, 128>}, {pipeline_mode = #tpu.pipeline_mode<synchronous>, transform_indices = @transform_6, window_bounds = array<i64: 128, 128>}, {transform_indices = @transform_7, window_bounds = array<i64: 16, 128>}, {transform_indices = @transform_8, window_bounds = array<i64: 16, 128>}, {transform_indices = @transform_9, window_bounds = array<i64: 16, 128>}]} {
    %c0 = arith.constant 0 : index
    %c0_0 = arith.constant 0 : index
    %0 = vector.load %arg1[%c0, %c0_0] : memref<16x128xf32, #tpu.memory_space<vmem>>, vector<16x128xf32>
    %c0_1 = arith.constant 0 : index
    %c0_2 = arith.constant 0 : index
    %1 = vector.load %arg3[%c0_1, %c0_2] : memref<8x256xf32, #tpu.memory_space<vmem>>, vector<1x128xf32>
    %c0_3 = arith.constant 0 : index
    %c0_4 = arith.constant 0 : index
    %2 = vector.load %arg4[%c0_3, %c0_4] : memref<128x128xf32, #tpu.memory_space<vmem>>, vector<128x128xf32>
    %cst = arith.constant dense<0.000000e+00> : vector<16x128xf32>
    %3 = tpu.matmul %0, %2, %cst {dimension_numbers = #tpu.dot_dimension_numbers<[1], [0], [0], [1], [0, 0, 1, 1], [], []>} : vector<16x128xf32>, vector<128x128xf32>, vector<16x128xf32> -> vector<16x128xf32>
    %4 = vector.broadcast %1 : vector<1x128xf32> to vector<16x128xf32>
    %5 = arith.addf %3, %4 : vector<16x128xf32>
    %cst_5 = arith.constant 0.000000e+00 : f32
    %6 = vector.broadcast %cst_5 : f32 to vector<16x128xf32>
    %7 = arith.cmpf ogt, %5, %6 : vector<16x128xf32>
    %cst_6 = arith.constant 0.00999999977 : f32
    %8 = vector.broadcast %cst_6 : f32 to vector<16x128xf32>
    %9 = arith.mulf %8, %5 : vector<16x128xf32>
    %10 = arith.select %7, %5, %9 : vector<16x128xi1>, vector<16x128xf32>
    %c1 = arith.constant 1 : index
    %c0_7 = arith.constant 0 : index
    %11 = vector.load %arg3[%c1, %c0_7] : memref<8x256xf32, #tpu.memory_space<vmem>>, vector<1x256xf32>
    %c0_8 = arith.constant 0 : index
    %c0_9 = arith.constant 0 : index
    %12 = vector.load %arg5[%c0_8, %c0_9] : memref<128x256xf32, #tpu.memory_space<vmem>>, vector<128x256xf32>
    %cst_10 = arith.constant dense<0.000000e+00> : vector<16x256xf32>
    %13 = tpu.matmul %10, %12, %cst_10 {dimension_numbers = #tpu.dot_dimension_numbers<[1], [0], [0], [1], [0, 0, 1, 1], [], []>} : vector<16x128xf32>, vector<128x256xf32>, vector<16x256xf32> -> vector<16x256xf32>
    %14 = vector.broadcast %11 : vector<1x256xf32> to vector<16x256xf32>
    %15 = arith.addf %13, %14 : vector<16x256xf32>
    %16 = vector.extract_strided_slice %15 {offsets = [0, 0], sizes = [16, 128], strides = [1, 1]} : vector<16x256xf32> to vector<16x128xf32>
    %17 = vector.extract_strided_slice %15 {offsets = [0, 128], sizes = [16, 128], strides = [1, 1]} : vector<16x256xf32> to vector<16x128xf32>
    %c0_11 = arith.constant 0 : index
    %c0_12 = arith.constant 0 : index
    %18 = vector.load %arg2[%c0_11, %c0_12] : memref<16x128xf32, #tpu.memory_space<vmem>>, vector<16x128xf32>
    %cst_13 = arith.constant 5.000000e-01 : f32
    %19 = vector.broadcast %cst_13 : f32 to vector<16x128xf32>
    %20 = arith.mulf %19, %17 : vector<16x128xf32>
    %21 = math.exp %20 : vector<16x128xf32>
    %22 = arith.mulf %18, %21 : vector<16x128xf32>
    %23 = arith.addf %16, %22 : vector<16x128xf32>
    %c2 = arith.constant 2 : index
    %c0_14 = arith.constant 0 : index
    %24 = vector.load %arg3[%c2, %c0_14] : memref<8x256xf32, #tpu.memory_space<vmem>>, vector<1x128xf32>
    %c0_15 = arith.constant 0 : index
    %c0_16 = arith.constant 0 : index
    %25 = vector.load %arg6[%c0_15, %c0_16] : memref<128x128xf32, #tpu.memory_space<vmem>>, vector<128x128xf32>
    %cst_17 = arith.constant dense<0.000000e+00> : vector<16x128xf32>
    %26 = tpu.matmul %23, %25, %cst_17 {dimension_numbers = #tpu.dot_dimension_numbers<[1], [0], [0], [1], [0, 0, 1, 1], [], []>} : vector<16x128xf32>, vector<128x128xf32>, vector<16x128xf32> -> vector<16x128xf32>
    %27 = vector.broadcast %24 : vector<1x128xf32> to vector<16x128xf32>
    %28 = arith.addf %26, %27 : vector<16x128xf32>
    %cst_18 = arith.constant 0.000000e+00 : f32
    %29 = vector.broadcast %cst_18 : f32 to vector<16x128xf32>
    %30 = arith.cmpf ogt, %28, %29 : vector<16x128xf32>
    %cst_19 = arith.constant 0.00999999977 : f32
    %31 = vector.broadcast %cst_19 : f32 to vector<16x128xf32>
    %32 = arith.mulf %31, %28 : vector<16x128xf32>
    %33 = arith.select %30, %28, %32 : vector<16x128xi1>, vector<16x128xf32>
    %c3 = arith.constant 3 : index
    %c0_20 = arith.constant 0 : index
    %34 = vector.load %arg3[%c3, %c0_20] : memref<8x256xf32, #tpu.memory_space<vmem>>, vector<1x128xf32>
    %c0_21 = arith.constant 0 : index
    %c0_22 = arith.constant 0 : index
    %35 = vector.load %arg7[%c0_21, %c0_22] : memref<128x128xf32, #tpu.memory_space<vmem>>, vector<128x128xf32>
    %cst_23 = arith.constant dense<0.000000e+00> : vector<16x128xf32>
    %36 = tpu.matmul %33, %35, %cst_23 {dimension_numbers = #tpu.dot_dimension_numbers<[1], [0], [0], [1], [0, 0, 1, 1], [], []>} : vector<16x128xf32>, vector<128x128xf32>, vector<16x128xf32> -> vector<16x128xf32>
    %37 = vector.broadcast %34 : vector<1x128xf32> to vector<16x128xf32>
    %38 = arith.addf %36, %37 : vector<16x128xf32>
    %c0_24 = arith.constant 0 : index
    %c0_25 = arith.constant 0 : index
    %39 = vector.load %arg8[%c0_24, %c0_25] : memref<16x128xf32, #tpu.memory_space<vmem>>, vector<16x128xf32>
    tpu.vector_store %arg8[%c0_24, %c0_25], %38 {strides = array<i32>} : memref<16x128xf32, #tpu.memory_space<vmem>>, vector<16x128xf32>,
    %c0_26 = arith.constant 0 : index
    %c0_27 = arith.constant 0 : index
    %40 = vector.load %arg9[%c0_26, %c0_27] : memref<16x128xf32, #tpu.memory_space<vmem>>, vector<16x128xf32>
    tpu.vector_store %arg9[%c0_26, %c0_27], %16 {strides = array<i32>} : memref<16x128xf32, #tpu.memory_space<vmem>>, vector<16x128xf32>,
    %c0_28 = arith.constant 0 : index
    %c0_29 = arith.constant 0 : index
    %41 = vector.load %arg10[%c0_28, %c0_29] : memref<16x128xf32, #tpu.memory_space<vmem>>, vector<16x128xf32>
    tpu.vector_store %arg10[%c0_28, %c0_29], %17 {strides = array<i32>} : memref<16x128xf32, #tpu.memory_space<vmem>>, vector<16x128xf32>,
    return
  }
  func.func @transform_0(%arg0: i32) -> (i32, i32) {
    %c0_i32 = arith.constant 0 : i32
    %c0_i32_0 = arith.constant 0 : i32
    return %arg0, %c0_i32 : i32, i32
  }
  func.func @transform_1(%arg0: i32) -> (i32, i32) {
    %c0_i32 = arith.constant 0 : i32
    %c0_i32_0 = arith.constant 0 : i32
    return %arg0, %c0_i32 : i32, i32
  }
  func.func @transform_2(%arg0: i32) -> (i32, i32) {
    %c0_i32 = arith.constant 0 : i32
    %c0_i32_0 = arith.constant 0 : i32
    %c0_i32_1 = arith.constant 0 : i32
    return %c0_i32, %c0_i32_0 : i32, i32
  }
  func.func @transform_3(%arg0: i32) -> (i32, i32) {
    %c0_i32 = arith.constant 0 : i32
    %c0_i32_0 = arith.constant 0 : i32
    %c0_i32_1 = arith.constant 0 : i32
    return %c0_i32, %c0_i32_0 : i32, i32
  }
  func.func @transform_4(%arg0: i32) -> (i32, i32) {
    %c0_i32 = arith.constant 0 : i32
    %c0_i32_0 = arith.constant 0 : i32
    %c0_i32_1 = arith.constant 0 : i32
    return %c0_i32, %c0_i32_0 : i32, i32
  }
  func.func @transform_5(%arg0: i32) -> (i32, i32) {
    %c0_i32 = arith.constant 0 : i32
    %c0_i32_0 = arith.constant 0 : i32
    %c0_i32_1 = arith.constant 0 : i32
    return %c0_i32, %c0_i32_0 : i32, i32
  }
  func.func @transform_6(%arg0: i32) -> (i32, i32) {
    %c0_i32 = arith.constant 0 : i32
    %c0_i32_0 = arith.constant 0 : i32
    %c0_i32_1 = arith.constant 0 : i32
    return %c0_i32, %c0_i32_0 : i32, i32
  }
  func.func @transform_7(%arg0: i32) -> (i32, i32) {
    %c0_i32 = arith.constant 0 : i32
    %c0_i32_0 = arith.constant 0 : i32
    return %arg0, %c0_i32 : i32, i32
  }
  func.func @transform_8(%arg0: i32) -> (i32, i32) {
    %c0_i32 = arith.constant 0 : i32
    %c0_i32_0 = arith.constant 0 : i32
    return %arg0, %c0_i32 : i32, i32
  }
  func.func @transform_9(%arg0: i32) -> (i32, i32) {
    %c0_i32 = arith.constant 0 : i32
    %c0_i32_0 = arith.constant 0 : i32
    return %arg0, %c0_i32 : i32, i32
  }
}

module attributes {stable_mosaic.version = 11 : i64} {
  func.func @kernel(%arg0: i32, %arg1: memref<16x128xf32, #tpu.memory_space<vmem>>, %arg2: memref<16x128xf32, #tpu.memory_space<vmem>>, %arg3: memref<8x256xf32, #tpu.memory_space<vmem>>, %arg4: memref<128x128xf32, #tpu.memory_space<vmem>>, %arg5: memref<128x256xf32, #tpu.memory_space<vmem>>, %arg6: memref<128x128xf32, #tpu.memory_space<vmem>>, %arg7: memref<128x128xf32, #tpu.memory_space<vmem>>, %arg8: memref<16x128xf32, #tpu.memory_space<vmem>>, %arg9: memref<16x128xf32, #tpu.memory_space<vmem>>, %arg10: memref<16x128xf32, #tpu.memory_space<vmem>>) attributes {dimension_semantics = [#tpu.dimension_semantics<parallel>], iteration_bounds = array<i64: 1>, scalar_prefetch = 0 : i64, scratch_operands = 0 : i64, tpu.core_type = #tpu.core_type<tc>, window_params = [{transform_indices = @transform_0, window_bounds = array<i64: 16, 128>}, {transform_indices = @transform_1, window_bounds = array<i64: 16, 128>}, {pipeline_mode = #tpu.pipeline_mode<synchronous>, transform_indices = @transform_2, window_bounds = array<i64: 8, 256>}, {pipeline_mode = #tpu.pipeline_mode<synchronous>, transform_indices = @transform_3, window_bounds = array<i64: 128, 128>}, {pipeline_mode = #tpu.pipeline_mode<synchronous>, transform_indices = @transform_4, window_bounds = array<i64: 128, 256>}, {pipeline_mode = #tpu.pipeline_mode<synchronous>, transform_indices = @transform_5, window_bounds = array<i64: 128, 128>}, {pipeline_mode = #tpu.pipeline_mode<synchronous>, transform_indices = @transform_6, window_bounds = array<i64: 128, 128>}, {transform_indices = @transform_7, window_bounds = array<i64: 16, 128>}, {transform_indices = @transform_8, window_bounds = array<i64: 16, 128>}, {transform_indices = @transform_9, window_bounds = array<i64: 16, 128>}]} {
    %c0 = arith.constant 0 : index
    %c0_0 = arith.constant 0 : index
    %0 = vector.load %arg1[%c0, %c0_0] : memref<16x128xf32, #tpu.memory_space<vmem>>, vector<16x128xf32>
    %c0_1 = arith.constant 0 : index
    %c0_2 = arith.constant 0 : index
    %1 = vector.load %arg3[%c0_1, %c0_2] : memref<8x256xf32, #tpu.memory_space<vmem>>, vector<1x128xf32>
    %c0_3 = arith.constant 0 : index
    %c0_4 = arith.constant 0 : index
    %2 = vector.load %arg4[%c0_3, %c0_4] : memref<128x128xf32, #tpu.memory_space<vmem>>, vector<128x128xf32>
    %cst = arith.constant dense<0.000000e+00> : vector<16x128xf32>
    %3 = tpu.matmul %0, %2, %cst {dimension_numbers = #tpu.dot_dimension_numbers<[1], [0], [0], [1], [0, 0, 1, 1], [], []>} : vector<16x128xf32>, vector<128x128xf32>, vector<16x128xf32> -> vector<16x128xf32>
    %4 = vector.broadcast %1 : vector<1x128xf32> to vector<16x128xf32>
    %5 = arith.addf %3, %4 : vector<16x128xf32>
    %cst_5 = arith.constant 0.000000e+00 : f32
    %6 = vector.broadcast %cst_5 : f32 to vector<16x128xf32>
    %7 = arith.cmpf ogt, %5, %6 : vector<16x128xf32>
    %cst_6 = arith.constant 0.00999999977 : f32
    %8 = vector.broadcast %cst_6 : f32 to vector<16x128xf32>
    %9 = arith.mulf %8, %5 : vector<16x128xf32>
    %10 = arith.select %7, %5, %9 : vector<16x128xi1>, vector<16x128xf32>
    %c1 = arith.constant 1 : index
    %c0_7 = arith.constant 0 : index
    %11 = vector.load %arg3[%c1, %c0_7] : memref<8x256xf32, #tpu.memory_space<vmem>>, vector<1x256xf32>
    %c0_8 = arith.constant 0 : index
    %c0_9 = arith.constant 0 : index
    %12 = vector.load %arg5[%c0_8, %c0_9] : memref<128x256xf32, #tpu.memory_space<vmem>>, vector<128x256xf32>
    %cst_10 = arith.constant dense<0.000000e+00> : vector<16x256xf32>
    %13 = tpu.matmul %10, %12, %cst_10 {dimension_numbers = #tpu.dot_dimension_numbers<[1], [0], [0], [1], [0, 0, 1, 1], [], []>} : vector<16x128xf32>, vector<128x256xf32>, vector<16x256xf32> -> vector<16x256xf32>
    %14 = vector.broadcast %11 : vector<1x256xf32> to vector<16x256xf32>
    %15 = arith.addf %13, %14 : vector<16x256xf32>
    %16 = vector.extract_strided_slice %15 {offsets = [0, 0], sizes = [16, 128], strides = [1, 1]} : vector<16x256xf32> to vector<16x128xf32>
    %17 = vector.extract_strided_slice %15 {offsets = [0, 128], sizes = [16, 128], strides = [1, 1]} : vector<16x256xf32> to vector<16x128xf32>
    %c0_11 = arith.constant 0 : index
    %c0_12 = arith.constant 0 : index
    %18 = vector.load %arg2[%c0_11, %c0_12] : memref<16x128xf32, #tpu.memory_space<vmem>>, vector<16x128xf32>
    %cst_13 = arith.constant 5.000000e-01 : f32
    %19 = vector.broadcast %cst_13 : f32 to vector<16x128xf32>
    %20 = arith.mulf %19, %17 : vector<16x128xf32>
    %21 = math.exp %20 : vector<16x128xf32>
    %22 = arith.mulf %18, %21 : vector<16x128xf32>
    %23 = arith.addf %16, %22 : vector<16x128xf32>
    %c2 = arith.constant 2 : index
    %c0_14 = arith.constant 0 : index
    %24 = vector.load %arg3[%c2, %c0_14] : memref<8x256xf32, #tpu.memory_space<vmem>>, vector<1x128xf32>
    %c0_15 = arith.constant 0 : index
    %c0_16 = arith.constant 0 : index
    %25 = vector.load %arg6[%c0_15, %c0_16] : memref<128x128xf32, #tpu.memory_space<vmem>>, vector<128x128xf32>
    %cst_17 = arith.constant dense<0.000000e+00> : vector<16x128xf32>
    %26 = tpu.matmul %23, %25, %cst_17 {dimension_numbers = #tpu.dot_dimension_numbers<[1], [0], [0], [1], [0, 0, 1, 1], [], []>} : vector<16x128xf32>, vector<128x128xf32>, vector<16x128xf32> -> vector<16x128xf32>
    %27 = vector.broadcast %24 : vector<1x128xf32> to vector<16x128xf32>
    %28 = arith.addf %26, %27 : vector<16x128xf32>
    %cst_18 = arith.constant 0.000000e+00 : f32
    %29 = vector.broadcast %cst_18 : f32 to vector<16x128xf32>
    %30 = arith.cmpf ogt, %28, %29 : vector<16x128xf32>
    %cst_19 = arith.constant 0.00999999977 : f32
    %31 = vector.broadcast %cst_19 : f32 to vector<16x128xf32>
    %32 = arith.mulf %31, %28 : vector<16x128xf32>
    %33 = arith.select %30, %28, %32 : vector<16x128xi1>, vector<16x128xf32>
    %c3 = arith.constant 3 : index
    %c0_20 = arith.constant 0 : index
    %34 = vector.load %arg3[%c3, %c0_20] : memref<8x256xf32, #tpu.memory_space<vmem>>, vector<1x128xf32>
    %c0_21 = arith.constant 0 : index
    %c0_22 = arith.constant 0 : index
    %35 = vector.load %arg7[%c0_21, %c0_22] : memref<128x128xf32, #tpu.memory_space<vmem>>, vector<128x128xf32>
    %cst_23 = arith.constant dense<0.000000e+00> : vector<16x128xf32>
    %36 = tpu.matmul %33, %35, %cst_23 {dimension_numbers = #tpu.dot_dimension_numbers<[1], [0], [0], [1], [0, 0, 1, 1], [], []>} : vector<16x128xf32>, vector<128x128xf32>, vector<16x128xf32> -> vector<16x128xf32>
    %37 = vector.broadcast %34 : vector<1x128xf32> to vector<16x128xf32>
    %38 = arith.addf %36, %37 : vector<16x128xf32>
    %c0_24 = arith.constant 0 : index
    %c0_25 = arith.constant 0 : index
    %39 = vector.load %arg8[%c0_24, %c0_25] : memref<16x128xf32, #tpu.memory_space<vmem>>, vector<16x128xf32>
    tpu.vector_store %arg8[%c0_24, %c0_25], %38 {strides = array<i32>} : memref<16x128xf32, #tpu.memory_space<vmem>>, vector<16x128xf32>,
    %c0_26 = arith.constant 0 : index
    %c0_27 = arith.constant 0 : index
    %40 = vector.load %arg9[%c0_26, %c0_27] : memref<16x128xf32, #tpu.memory_space<vmem>>, vector<16x128xf32>
    tpu.vector_store %arg9[%c0_26, %c0_27], %16 {strides = array<i32>} : memref<16x128xf32, #tpu.memory_space<vmem>>, vector<16x128xf32>,
    %c0_28 = arith.constant 0 : index
    %c0_29 = arith.constant 0 : index
    %41 = vector.load %arg10[%c0_28, %c0_29] : memref<16x128xf32, #tpu.memory_space<vmem>>, vector<16x128xf32>
    tpu.vector_store %arg10[%c0_28, %c0_29], %17 {strides = array<i32>} : memref<16x128xf32, #tpu.memory_space<vmem>>, vector<16x128xf32>,
    return
  }
  func.func @transform_0(%arg0: i32) -> (i32, i32) {
    %c0_i32 = arith.constant 0 : i32
    %c0_i32_0 = arith.constant 0 : i32
    return %arg0, %c0_i32 : i32, i32
  }
  func.func @transform_1(%arg0: i32) -> (i32, i32) {
    %c0_i32 = arith.constant 0 : i32
    %c0_i32_0 = arith.constant 0 : i32
    return %arg0, %c0_i32 : i32, i32
  }
  func.func @transform_2(%arg0: i32) -> (i32, i32) {
    %c0_i32 = arith.constant 0 : i32
    %c0_i32_0 = arith.constant 0 : i32
    %c0_i32_1 = arith.constant 0 : i32
    return %c0_i32, %c0_i32_0 : i32, i32
  }
  func.func @transform_3(%arg0: i32) -> (i32, i32) {
    %c0_i32 = arith.constant 0 : i32
    %c0_i32_0 = arith.constant 0 : i32
    %c0_i32_1 = arith.constant 0 : i32
    return %c0_i32, %c0_i32_0 : i32, i32
  }
  func.func @transform_4(%arg0: i32) -> (i32, i32) {
    %c0_i32 = arith.constant 0 : i32
    %c0_i32_0 = arith.constant 0 : i32
    %c0_i32_1 = arith.constant 0 : i32
    return %c0_i32, %c0_i32_0 : i32, i32
  }
  func.func @transform_5(%arg0: i32) -> (i32, i32) {
    %c0_i32 = arith.constant 0 : i32
    %c0_i32_0 = arith.constant 0 : i32
    %c0_i32_1 = arith.constant 0 : i32
    return %c0_i32, %c0_i32_0 : i32, i32
  }
  func.func @transform_6(%arg0: i32) -> (i32, i32) {
    %c0_i32 = arith.constant 0 : i32
    %c0_i32_0 = arith.constant 0 : i32
    %c0_i32_1 = arith.constant 0 : i32
    return %c0_i32, %c0_i32_0 : i32, i32
  }
  func.func @transform_7(%arg0: i32) -> (i32, i32) {
    %c0_i32 = arith.constant 0 : i32
    %c0_i32_0 = arith.constant 0 : i32
    return %arg0, %c0_i32 : i32, i32
  }
  func.func @transform_8(%arg0: i32) -> (i32, i32) {
    %c0_i32 = arith.constant 0 : i32
    %c0_i32_0 = arith.constant 0 : i32
    return %arg0, %c0_i32 : i32, i32
  }
  func.func @transform_9(%arg0: i32) -> (i32, i32) {
    %c0_i32 = arith.constant 0 : i32
    %c0_i32_0 = arith.constant 0 : i32
    return %arg0, %c0_i32 : i32, i32
  }
}

</mosaic_0001>

<bundles_post_ra>
// kernel: tpu_custom_call.1
= control target key start
LH: loop header
LB: loop body
LE: loop exit
PB: predicated region body
PF: predicated region fallthrough
CT: control target
= control target key end

     0   :  { %15 = vsyncpa [#allocation3], 0  ;;  %s1373_s0 = inlined_call_operand.hbm [shape: f32[16,128], index: 0, kind: input, shape index: {}]   ;;  %s1374_s1 = inlined_call_operand.hbm [shape: f32[16,128], index: 1, kind: input, shape index: {}]   ;;  %s1375_s2 = inlined_call_operand.hbm [shape: f32[8,256], index: 2, kind: input, shape index: {}]   ;;  %s1376_s3 = inlined_call_operand.hbm [shape: f32[128,128], index: 3, kind: input, shape index: {}]   ;;  %s1377_s4 = inlined_call_operand.hbm [shape: f32[128,256], index: 4, kind: input, shape index: {}]   ;;  %s1378_s5 = inlined_call_operand.hbm [shape: f32[128,128], index: 5, kind: input, shape index: {}]   ;;  %s1379_s6 = inlined_call_operand.hbm [shape: f32[128,128], index: 6, kind: input, shape index: {}]   ;;  %s1380_s7 = inlined_call_operand.hbm [shape: f32[16,128], index: 7, kind: output, shape index: {0}]   ;;  %s1381_s8 = inlined_call_operand.hbm [shape: f32[16,128], index: 8, kind: output, shape index: {1}]   ;;  %s1382_s9 = inlined_call_operand.hbm [shape: f32[16,128], index: 9, kind: output, shape index: {2}]  }
   0x1   :  { %16 = vsyncpa [#allocation6], 0 }
   0x2   :  { %17 = vsyncpa [#allocation9], 0 }
   0x3   :  { %18 = vsyncpa [#allocation12], 0 }
   0x4   :  { %19 = vsyncpa [#allocation4], 0 }
   0x5   :  { %20 = vsyncpa [#allocation16], 0  ;;  %s1143_s30 = smov [#allocation5]   ;;  %s1144_s11 = smov [#allocation8]  }
   0x6   :  { %s38_s10 = sshll.u32 %s1143_s30, 4  ;;  %s60_s12 = sshll.u32 %s1144_s11, 4  ;;  %s39_s10 = int_to_ptr.vmem [resolvable:$true] %s38_s10  ;;  %s1208_s12 = int_to_ptr.vmem [resolvable:$true] %s60_s12 }
   0x7   :  { %s911_s15 = scalar_lea.hbm %s1374_s1, 256 }
   0x8   :  { %p912_p0 = scmp.ne.s32.totalorder %s1374_s1, %s911_s15  ;;  %p915_p1 = scmp.lt.u32.totalorder %s911_s15, %s1374_s1 }
   0xa   :  { %p917_p2 = pnand %p915_p1, %p912_p0 }
   0xc   :  { %920 = shalt.err (!%p917_p2)
}
   0xd   :  { %s921_s20 = scalar_lea.vmem %s39_s10, 256  ;;  %p926_p4 = scmp.lt.s32.totalorder %s39_s10, %s39_s10 }
   0xe   :  { %p922_p3 = scmp.ne.s32.totalorder %s39_s10, %s921_s20  ;;  %p927_p5 = scmp.lt.s32.totalorder %s921_s20, %s921_s20 }
  0x10   :  { %p928_p6 = por %p927_p5, %p926_p4 }
  0x12   :  { %p929_p7 = pnand %p928_p6, %p922_p3 }
  0x14   :  { %932 = shalt.err (!%p929_p7)
}
  0x15   :  { %s1145_s21 = smov 128   ;;  %s1146_s22 = smov 8  }
  0x16   :  { %44 = dma.hbm_to_vmem [thread:$0]  %s1374_s1, 256, %s39_s10, [#allocation6], %s1145_s21, %s1145_s21, %s1146_s22  }
  0x17   :  { %s933_s27 = scalar_lea.hbm %s1376_s3, 2048 }
  0x18   :  { %p934_p8 = scmp.ne.s32.totalorder %s1376_s3, %s933_s27  ;;  %p937_p9 = scmp.lt.u32.totalorder %s933_s27, %s1376_s3 }
  0x1a   :  { %p939_p10 = pnand %p937_p9, %p934_p8 }
  0x1c   :  { %942 = shalt.err (!%p939_p10)
}
  0x1d   :  { %s943_s13 = scalar_lea.vmem %s1208_s12, 2048  ;;  %p948_p12 = scmp.lt.s32.totalorder %s1208_s12, %s1208_s12 }
  0x1e   :  { %p944_p11 = scmp.ne.s32.totalorder %s1208_s12, %s943_s13  ;;  %p949_p13 = scmp.lt.s32.totalorder %s943_s13, %s943_s13 }
  0x20   :  { %p950_p0 = por %p949_p13, %p948_p12 }
  0x22   :  { %p951_p1 = pnand %p950_p0, %p944_p11 }
  0x24   :  { %954 = shalt.err (!%p951_p1)
}
  0x25   :  { %66 = dma.hbm_to_vmem [thread:$0]  %s1376_s3, 2048, %s1208_s12, [#allocation9], %s1145_s21, %s1145_s21, %s1146_s22  }
  0x26   :  { %s1147_s14 = smov [#allocation11]   ;;  %s1148_s16 = smov [#allocation2]  }
  0x27   :  { %s84_s15 = sshll.u32 %s1147_s14, 4  ;;  %s26_s17 = sshll.u32 %s1148_s16, 4  ;;  %s85_s15 = int_to_ptr.vmem [resolvable:$true] %s84_s15  ;;  %s1245_s17 = int_to_ptr.vmem [resolvable:$true] %s26_s17 }
  0x28   :  { %s955_s20 = scalar_lea.hbm %s1378_s5, 2048 }
  0x29   :  { %p956_p2 = scmp.ne.s32.totalorder %s1378_s5, %s955_s20  ;;  %p959_p3 = scmp.lt.u32.totalorder %s955_s20, %s1378_s5 }
  0x2b   :  { %p961_p4 = pnand %p959_p3, %p956_p2 }
  0x2d   :  { %964 = shalt.err (!%p961_p4)
}
  0x2e   :  { %s965_s3 = scalar_lea.vmem %s85_s15, 2048  ;;  %p970_p6 = scmp.lt.s32.totalorder %s85_s15, %s85_s15 }
  0x2f   :  { %p966_p5 = scmp.ne.s32.totalorder %s85_s15, %s965_s3  ;;  %p971_p7 = scmp.lt.s32.totalorder %s965_s3, %s965_s3 }
  0x31   :  { %p972_p8 = por %p971_p7, %p970_p6 }
  0x33   :  { %p973_p9 = pnand %p972_p8, %p966_p5 }
  0x35   :  { %976 = shalt.err (!%p973_p9)
}
  0x36   :  { %90 = dma.hbm_to_vmem [thread:$0]  %s1378_s5, 2048, %s85_s15, [#allocation12], %s1145_s21, %s1145_s21, %s1146_s22  }
  0x37   :  { %s977_s30 = scalar_lea.hbm %s1373_s0, 256 }
  0x38   :  { %p978_p10 = scmp.ne.s32.totalorder %s1373_s0, %s977_s30  ;;  %p981_p11 = scmp.lt.u32.totalorder %s977_s30, %s1373_s0 }
  0x3a   :  { %p983_p12 = pnand %p981_p11, %p978_p10 }
  0x3c   :  { %986 = shalt.err (!%p983_p12)
}
  0x3d   :  { %s987_s14 = scalar_lea.vmem %s1245_s17, 256  ;;  %p992_p0 = scmp.lt.s32.totalorder %s1245_s17, %s1245_s17 }
  0x3e   :  { %p988_p13 = scmp.ne.s32.totalorder %s1245_s17, %s987_s14  ;;  %p993_p1 = scmp.lt.s32.totalorder %s987_s14, %s987_s14 }
  0x40   :  { %p994_p2 = por %p993_p1, %p992_p0 }
  0x42   :  { %p995_p3 = pnand %p994_p2, %p988_p13 }
  0x44   :  { %998 = shalt.err (!%p995_p3)
}
  0x45   :  { %32 = dma.hbm_to_vmem [thread:$0]  %s1373_s0, 256, %s1245_s17, [#allocation3], %s1145_s21, %s1145_s21, %s1146_s22  }
  0x46   :  { %s1149_s16 = smov [#allocation7]   ;;  %s1150_s19 = smov [#allocation10]  }
  0x47   :  { %s51_s18 = sshll.u32 %s1149_s16, 4  ;;  %s72_s20 = sshll.u32 %s1150_s19, 4  ;;  %s52_s18 = int_to_ptr.vmem [resolvable:$true] %s51_s18  ;;  %s1282_s20 = int_to_ptr.vmem [resolvable:$true] %s72_s20 }
  0x48   :  { %s999_s25 = scalar_lea.hbm %s1375_s2, 256 }
  0x49   :  { %p1000_p4 = scmp.ne.s32.totalorder %s1375_s2, %s999_s25  ;;  %p1003_p5 = scmp.lt.u32.totalorder %s999_s25, %s1375_s2 }
  0x4b   :  { %p1005_p6 = pnand %p1003_p5, %p1000_p4 }
  0x4d   :  { %1008 = shalt.err (!%p1005_p6)
}
  0x4e   :  { %s1009_s0 = scalar_lea.vmem %s52_s18, 256  ;;  %p1014_p8 = scmp.lt.s32.totalorder %s52_s18, %s52_s18 }
  0x4f   :  { %p1010_p7 = scmp.ne.s32.totalorder %s52_s18, %s1009_s0  ;;  %p1015_p9 = scmp.lt.s32.totalorder %s1009_s0, %s1009_s0 }
  0x51   :  { %p1016_p10 = por %p1015_p9, %p1014_p8 }
  0x53   :  { %p1017_p11 = pnand %p1016_p10, %p1010_p7 }
  0x55   :  { %1020 = shalt.err (!%p1017_p11)
}
  0x56   :  { %54 = dma.hbm_to_vmem [thread:$0]  %s1375_s2, 256, %s52_s18, [#allocation6]  }
  0x57   :  { %s1021_s11 = scalar_lea.hbm %s1377_s4, 4096 }
  0x58   :  { %p1022_p12 = scmp.ne.s32.totalorder %s1377_s4, %s1021_s11  ;;  %p1025_p13 = scmp.lt.u32.totalorder %s1021_s11, %s1377_s4 }
  0x5a   :  { %p1027_p0 = pnand %p1025_p13, %p1022_p12 }
  0x5c   :  { %1030 = shalt.err (!%p1027_p0)
}
  0x5d   :  { %s1031_s5 = scalar_lea.vmem %s1282_s20, 4096  ;;  %p1036_p2 = scmp.lt.s32.totalorder %s1282_s20, %s1282_s20 }
  0x5e   :  { %p1032_p1 = scmp.ne.s32.totalorder %s1282_s20, %s1031_s5  ;;  %p1037_p3 = scmp.lt.s32.totalorder %s1031_s5, %s1031_s5 }
  0x60   :  { %p1038_p4 = por %p1037_p3, %p1036_p2 }
  0x62   :  { %p1039_p5 = pnand %p1038_p4, %p1032_p1 }
  0x64   :  { %1042 = shalt.err (!%p1039_p5)
}
  0x65   :  { %s1151_s2 = smov 256   ;;  %s1152_s15 = smov 16  }
  0x66   :  { %78 = dma.hbm_to_vmem [thread:$0]  %s1377_s4, 4096, %s1282_s20, [#allocation9], %s1151_s2, %s1151_s2, %s1152_s15  }
  0x67   :  { %s1153_s19 = smov [#allocation13]   ;;  %s1043_s26 = scalar_lea.hbm %s1379_s6, 2048 }
  0x68   :  { %s96_s23 = sshll.u32 %s1153_s19, 4  ;;  %p1044_p6 = scmp.ne.s32.totalorder %s1379_s6, %s1043_s26  ;;  %s97_s23 = int_to_ptr.vmem [resolvable:$true] %s96_s23 }
  0x69   :  { %p1047_p7 = scmp.lt.u32.totalorder %s1043_s26, %s1379_s6 }
  0x6b   :  { %p1049_p8 = pnand %p1047_p7, %p1044_p6 }
  0x6d   :  { %1052 = shalt.err (!%p1049_p8)
}
  0x6e   :  { %s1053_s17 = scalar_lea.vmem %s97_s23, 2048  ;;  %p1058_p10 = scmp.lt.s32.totalorder %s97_s23, %s97_s23 }
  0x6f   :  { %p1054_p9 = scmp.ne.s32.totalorder %s97_s23, %s1053_s17  ;;  %p1059_p11 = scmp.lt.s32.totalorder %s1053_s17, %s1053_s17 }
  0x71   :  { %p1060_p12 = por %p1059_p11, %p1058_p10 }
  0x73   :  { %p1061_p13 = pnand %p1060_p12, %p1054_p9 }
  0x75   :  { %1064 = shalt.err (!%p1061_p13)
}
  0x76   :  { %102 = dma.hbm_to_vmem [thread:$0]  %s1379_s6, 2048, %s97_s23, [#allocation12], %s1145_s21, %s1145_s21, %s1146_s22  }
  0x77   :  { %1131 = dma.done.wait [#allocation3], 256  }
  0x78   :  { %1132 = vsyncadd [#allocation3], 4294967040 }
  0x79   :  { %1133 = dma.done.wait [#allocation6], 512  }
  0x7a   :  { %1134 = vsyncadd [#allocation6], 4294966784 }
  0x7b   :  { %1135 = dma.done.wait [#allocation9], 6144  }
  0x7c   :  { %1136 = vsyncadd [#allocation9], 4294961152 }
  0x7d   :  { %1137 = dma.done.wait [#allocation12], 4096  }
  0x7e   :  { %1138 = vsyncadd [#allocation12], 4294963200  ;;  %v127_v0 = vld [vmem:[#allocation8] sm:$0xff]  ;;  %v128_v1 = vld [vmem:[#allocation8 + $0x8] sm:$0xff]  ;;  %s1155_s6 = smov [#allocation15]  }
  0x7f   :  { %v129_v2 = vld [vmem:[#allocation8 + $0x10] sm:$0xff]  ;;  %v764_v3 = vpack.c.bf16 %v128_v1, %v127_v0  ;;  %v130_v4 = vld [vmem:[#allocation8 + $0x18] sm:$0xff]  ;;  %v131_v6 = vld [vmem:[#allocation8 + $0x20] sm:$0xff]  ;;  %s571_s28 = sshll.u32 %s1155_s6, 4  ;;  %s572_s28 = int_to_ptr.vmem [resolvable:$true] %s571_s28 }
  0x80   :  { %v768_v5 = vpack.c.bf16 %v130_v4, %v129_v2  ;;  %v132_v7 = vld [vmem:[#allocation8 + $0x28] sm:$0xff]  ;;  %v133_v9 = vld [vmem:[#allocation8 + $0x30] sm:$0xff]  ;;  %v134_v10 = vld [vmem:[#allocation8 + $0x38] sm:$0xff]  ;;  %s1065_s29 = scalar_lea.vmem %s572_s28, 256  ;;  %p1070_p1 = scmp.lt.s32.totalorder %s572_s28, %s572_s28 }
  0x81   :  { %765 = vmatprep.subr.bf16.mxu0 %v764_v3  ;;  %v772_v8 = vpack.c.bf16 %v132_v7, %v131_v6  ;;  %v124_v11 = vld [vmem:[#allocation2] sm:$0xff]  ;;  %v227_v12 = vld [vmem:[#allocation10 + $0x8] sm:$0xff]  ;;  %v229_v13 = vld [vmem:[#allocation10 + $0x18] sm:$0xff]  ;;  %v776_v24 = vpack.c.bf16 %v134_v10, %v133_v9  ;;  %v1154_v10 = vmov 0.0   ;;  %p1066_p0 = scmp.ne.s32.totalorder %s572_s28, %s1065_s29  ;;  %p1071_p2 = scmp.lt.s32.totalorder %s1065_s29, %s1065_s29 }
  0x82   :  { %767 = vmatpush3.bf16.msra.mxu0 %v764_v3  ;;  %691 = vmatprep.mubr.f32.mxu0 %v124_v11  ;;  %v226_v14 = vld [vmem:[#allocation10] sm:$0xff]  ;;  %v796_v15 = vpack.c.bf16 %v229_v13, %v227_v12  ;;  %v228_v16 = vld [vmem:[#allocation10 + $0x10] sm:$0xff]  ;;  %v231_v17 = vld [vmem:[#allocation10 + $0x28] sm:$0xff] }
  0x83   :  { %769 = vmatprep.subr.bf16.mxu0 %v768_v5  ;;  %v233_v18 = vld [vmem:[#allocation10 + $0x38] sm:$0xff]  ;;  %v798_v19 = vpack.c.bf16 %v228_v16, %v226_v14  ;;  %v230_v21 = vld [vmem:[#allocation10 + $0x20] sm:$0xff]  ;;  %v232_v22 = vld [vmem:[#allocation10 + $0x30] sm:$0xff]  ;;  %333 = vmatprep.mubr.f32.mxu1 %v1154_v10  ;;  %p1072_p3 = por %p1071_p2, %p1070_p1 }
  0x84   :  { %v800_v20 = vpack.c.bf16 %v233_v18, %v231_v17  ;;  %v235_v23 = vld [vmem:[#allocation10 + $0x48] sm:$0xff]  ;;  %797 = vmatprep.subr.bf16.mxu1 %v796_v15  ;;  %v237_v25 = vld [vmem:[#allocation10 + $0x58] sm:$0xff]  ;;  %v135_v26 = vld [vmem:[#allocation8 + $0x40] sm:$0xff]  ;;  %v802_v28 = vpack.c.bf16 %v232_v22, %v230_v21 }
  0x85   :  { %v136_v27 = vld [vmem:[#allocation8 + $0x48] sm:$0xff]  ;;  %799 = vmatpush1.bf16.msra.mxu1 %v798_v19  ;;  %v804_v29 = vpack.c.bf16 %v237_v25, %v235_v23  ;;  %v234_v30 = vld [vmem:[#allocation10 + $0x40] sm:$0xff]  ;;  %v236_v31 = vld [vmem:[#allocation10 + $0x50] sm:$0xff]  ;;  %p1073_p4 = pnand %p1072_p3, %p1066_p0 }
  0x86   :  { %771 = vmatpush3.bf16.msra.mxu0 %v768_v5  ;;  %801 = vmatprep.subr.bf16.mxu1 %v800_v20  ;;  %v239_v32 = vld [vmem:[#allocation10 + $0x68] sm:$0xff]  ;;  %v241_v33 = vld [vmem:[#allocation10 + $0x78] sm:$0xff]  ;;  %v780_v34 = vpack.c.bf16 %v136_v27, %v135_v26  ;;  %v137_v35 = vld [vmem:[#allocation8 + $0x50] sm:$0xff]  ;;  %v806_v37 = vpack.c.bf16 %v236_v31, %v234_v30 }
  0x87   :  { %773 = vmatprep.subr.bf16.mxu0 %v772_v8  ;;  %v138_v36 = vld [vmem:[#allocation8 + $0x58] sm:$0xff]  ;;  %v808_v38 = vpack.c.bf16 %v241_v33, %v239_v32  ;;  %v238_v39 = vld [vmem:[#allocation10 + $0x60] sm:$0xff]  ;;  %v240_v40 = vld [vmem:[#allocation10 + $0x70] sm:$0xff] }
  0x88   :  { %v243_v41 = vld [vmem:[#allocation10 + $0x88] sm:$0xff]  ;;  %v245_v42 = vld [vmem:[#allocation10 + $0x98] sm:$0xff]  ;;  %v784_v43 = vpack.c.bf16 %v138_v36, %v137_v35  ;;  %v139_v44 = vld [vmem:[#allocation8 + $0x60] sm:$0xff]  ;;  %v810_v46 = vpack.c.bf16 %v240_v40, %v238_v39 }
  0x89   :  { %803 = vmatpush1.bf16.msra.mxu1 %v802_v28  ;;  %v140_v45 = vld [vmem:[#allocation8 + $0x68] sm:$0xff]  ;;  %v812_v47 = vpack.c.bf16 %v245_v42, %v243_v41  ;;  %v242_v48 = vld [vmem:[#allocation10 + $0x80] sm:$0xff]  ;;  %v244_v49 = vld [vmem:[#allocation10 + $0x90] sm:$0xff] }
  0x8a   :  { %775 = vmatpush3.bf16.msra.mxu0 %v772_v8  ;;  %805 = vmatprep.subr.bf16.mxu1 %v804_v29  ;;  %v247_v50 = vld [vmem:[#allocation10 + $0xa8] sm:$0xff]  ;;  %v249_v51 = vld [vmem:[#allocation10 + $0xb8] sm:$0xff]  ;;  %v788_v52 = vpack.c.bf16 %v140_v45, %v139_v44  ;;  %v141_v53 = vld [vmem:[#allocation8 + $0x70] sm:$0xff]  ;;  %v814_v55 = vpack.c.bf16 %v244_v49, %v242_v48 }
  0x8b   :  { %777 = vmatprep.subr.bf16.mxu0 %v776_v24  ;;  %v142_v54 = vld [vmem:[#allocation8 + $0x78] sm:$0xff]  ;;  %v816_v56 = vpack.c.bf16 %v249_v51, %v247_v50  ;;  %v246_v57 = vld [vmem:[#allocation10 + $0xa0] sm:$0xff]  ;;  %v248_v58 = vld [vmem:[#allocation10 + $0xb0] sm:$0xff] }
  0x8c   :  { %v251_v59 = vld [vmem:[#allocation10 + $0xc8] sm:$0xff]  ;;  %v253_v60 = vld [vmem:[#allocation10 + $0xd8] sm:$0xff]  ;;  %v792_v61 = vpack.c.bf16 %v142_v54, %v141_v53  ;;  %v818_v62 = vpack.c.bf16 %v248_v58, %v246_v57  ;;  %v250_v1 = vld [vmem:[#allocation10 + $0xc0] sm:$0xff] }
  0x8d   :  { %807 = vmatpush1.bf16.msra.mxu1 %v806_v37  ;;  %v820_v63 = vpack.c.bf16 %v253_v60, %v251_v59  ;;  %v125_v0 = vld [vmem:[#allocation2 + $0x8] sm:$0xff]  ;;  %v252_v2 = vld [vmem:[#allocation10 + $0xd0] sm:$0xff]  ;;  %v255_v4 = vld [vmem:[#allocation10 + $0xe8] sm:$0xff] }
  0x8e   :  { %779 = vmatpush3.bf16.msra.mxu0 %v776_v24  ;;  %809 = vmatprep.subr.bf16.mxu1 %v808_v38  ;;  %v822_v3 = vpack.c.bf16 %v252_v2, %v250_v1  ;;  %v257_v5 = vld [vmem:[#allocation10 + $0xf8] sm:$0xff]  ;;  %v254_v7 = vld [vmem:[#allocation10 + $0xe0] sm:$0xff]  ;;  %v256_v8 = vld [vmem:[#allocation10 + $0xf0] sm:$0xff] }
  0x8f   :  { %781 = vmatprep.subr.bf16.mxu0 %v780_v34  ;;  %v824_v6 = vpack.c.bf16 %v257_v5, %v255_v4  ;;  %v826_v9 = vpack.c.bf16 %v256_v8, %v254_v7  ;;  %v359_v11 = vld [vmem:[#allocation11] sm:$0xff]  ;;  %v360_v12 = vld [vmem:[#allocation11 + $0x8] sm:$0xff]  ;;  %v361_v13 = vld [vmem:[#allocation11 + $0x10] sm:$0xff] }
  0x90   :  { %v828_v14 = vpack.c.bf16 %v360_v12, %v359_v11  ;;  %v362_v15 = vld [vmem:[#allocation11 + $0x18] sm:$0xff]  ;;  %v126_v17 = vld [vmem:[#allocation7] ss:$0 sm:$0xff]  ;;  %v363_v26 = vld [vmem:[#allocation11 + $0x20] sm:$0xff] }
  0x91   :  { %811 = vmatpush1.bf16.msra.mxu1 %v810_v46  ;;  %v832_v16 = vpack.c.bf16 %v362_v15, %v361_v13  ;;  %v364_v27 = vld [vmem:[#allocation11 + $0x28] sm:$0xff]  ;;  %v365_v29 = vld [vmem:[#allocation11 + $0x30] sm:$0xff]  ;;  %v366_v30 = vld [vmem:[#allocation11 + $0x38] sm:$0xff] }
  0x92   :  { %783 = vmatpush3.bf16.msra.mxu0 %v780_v34  ;;  %813 = vmatprep.subr.bf16.mxu1 %v812_v47  ;;  %v836_v28 = vpack.c.bf16 %v364_v27, %v363_v26  ;;  %v840_v31 = vpack.c.bf16 %v366_v30, %v365_v29  ;;  %v367_v32 = vld [vmem:[#allocation11 + $0x40] sm:$0xff]  ;;  %v368_v33 = vld [vmem:[#allocation11 + $0x48] sm:$0xff]  ;;  %v369_v35 = vld [vmem:[#allocation11 + $0x50] sm:$0xff] }
  0x93   :  { %785 = vmatprep.subr.bf16.mxu0 %v784_v43  ;;  %v844_v34 = vpack.c.bf16 %v368_v33, %v367_v32  ;;  %v370_v36 = vld [vmem:[#allocation11 + $0x58] sm:$0xff]  ;;  %v371_v37 = vld [vmem:[#allocation11 + $0x60] sm:$0xff]  ;;  %v372_v39 = vld [vmem:[#allocation11 + $0x68] sm:$0xff] }
  0x94   :  { %v848_v38 = vpack.c.bf16 %v370_v36, %v369_v35  ;;  %v852_v40 = vpack.c.bf16 %v372_v39, %v371_v37  ;;  %v373_v41 = vld [vmem:[#allocation11 + $0x70] sm:$0xff]  ;;  %v374_v42 = vld [vmem:[#allocation11 + $0x78] sm:$0xff]  ;;  %v457_v44 = vld [vmem:[#allocation13] sm:$0xff] }
  0x95   :  { %815 = vmatpush1.bf16.msra.mxu1 %v814_v55  ;;  %v458_v45 = vld [vmem:[#allocation13 + $0x8] sm:$0xff]  ;;  %v459_v46 = vld [vmem:[#allocation13 + $0x10] sm:$0xff]  ;;  %v460_v48 = vld [vmem:[#allocation13 + $0x18] sm:$0xff] }
  0x96   :  { %787 = vmatpush3.bf16.msra.mxu0 %v784_v43  ;;  %817 = vmatprep.subr.bf16.mxu1 %v816_v56  ;;  %v856_v43 = vpack.c.bf16 %v374_v42, %v373_v41  ;;  %v860_v47 = vpack.c.bf16 %v458_v45, %v457_v44  ;;  %v864_v49 = vpack.c.bf16 %v460_v48, %v459_v46  ;;  %v461_v50 = vld [vmem:[#allocation13 + $0x20] sm:$0xff]  ;;  %v462_v51 = vld [vmem:[#allocation13 + $0x28] sm:$0xff]  ;;  %v463_v53 = vld [vmem:[#allocation13 + $0x30] sm:$0xff] }
  0x97   :  { %789 = vmatprep.subr.bf16.mxu0 %v788_v52  ;;  %v464_v54 = vld [vmem:[#allocation13 + $0x38] sm:$0xff]  ;;  %v465_v56 = vld [vmem:[#allocation13 + $0x40] sm:$0xff]  ;;  %v466_v57 = vld [vmem:[#allocation13 + $0x48] sm:$0xff] }
  0x98   :  { %v872_v55 = vpack.c.bf16 %v464_v54, %v463_v53  ;;  %v876_v58 = vpack.c.bf16 %v466_v57, %v465_v56  ;;  %v467_v59 = vld [vmem:[#allocation13 + $0x50] sm:$0xff]  ;;  %v468_v60 = vld [vmem:[#allocation13 + $0x58] sm:$0xff]  ;;  %v470_v26 = vld [vmem:[#allocation13 + $0x68] sm:$0xff] }
  0x99   :  { %819 = vmatpush1.bf16.msra.mxu1 %v818_v62  ;;  %v259_v62 = vlaneseq  ;;  %v225_v1 = vld [vmem:[#allocation7 + $0x1] ss:$8 sm:$0x3] }
  0x9a   :  { %791 = vmatpush3.bf16.msra.mxu0 %v788_v52  ;;  %821 = vmatprep.subr.bf16.mxu1 %v820_v63  ;;  %v868_v52 = vpack.c.bf16 %v462_v51, %v461_v50  ;;  %v472_v29 = vld [vmem:[#allocation13 + $0x78] sm:$0xff] }
  0x9b   :  { %793 = vmatprep.subr.bf16.mxu0 %v792_v61  ;;  %v260_v63 = vshrl.u32 %v259_v62, 7 }
  0x9d   :  { %823 = vmatpush1.bf16.msra.mxu1 %v822_v3  ;;  %v265_v2 = vsub.s32 1, %v260_v63 }
  0x9e   :  { %795 = vmatpush3.bf16.msra.mxu0 %v792_v61  ;;  %825 = vmatprep.subr.bf16.mxu1 %v824_v6  ;;  %v880_v61 = vpack.c.bf16 %v468_v60, %v467_v59 }
  0x9f   :  { %829 = vmatprep.subr.bf16.mxu0 %v828_v14  ;;  %v266_v4 = vrot.slane %v225_v1, %v265_v2 }
  0xa1   :  { %692 = vmatmul.mubr.f32.vlgmr.msra.gmra.mrb[0].mxu0 %v125_v0  ;;  %827 = vmatpush1.bf16.msra.mxu1 %v826_v9  ;;  %v261_v0 = vsub.s32 0, %v260_v63 }
  0xa2   :  { %831 = vmatpush3.bf16.msra.mxu0 %v828_v14  ;;  %861 = vmatprep.subr.bf16.mxu1 %v860_v47 }
  0xa3   :  { %833 = vmatprep.subr.bf16.mxu0 %v832_v16  ;;  %v262_v3 = vrot.slane %v225_v1, %v261_v0 }
  0xa6   :  { %835 = vmatpush3.bf16.msra.mxu0 %v832_v16 }
  0xa7   :  { %837 = vmatprep.subr.bf16.mxu0 %v836_v28 }
  0xaa   :  { %839 = vmatpush3.bf16.msra.mxu0 %v836_v28  ;;  %v471_v28 = vld [vmem:[#allocation13 + $0x70] sm:$0xff] }
  0xab   :  { %841 = vmatprep.subr.bf16.mxu0 %v840_v31  ;;  %v888_v30 = vpack.c.bf16 %v472_v29, %v471_v28 }
  0xae   :  { %843 = vmatpush3.bf16.msra.mxu0 %v840_v31  ;;  %v358_v31 = vld [vmem:[#allocation7 + $0x2] ss:$0 sm:$0xff] }
  0xaf   :  { %845 = vmatprep.subr.bf16.mxu0 %v844_v34 }
  0xb2   :  { %847 = vmatpush3.bf16.msra.mxu0 %v844_v34 }
  0xb3   :  { %849 = vmatprep.subr.bf16.mxu0 %v848_v38 }
  0xb6   :  { %851 = vmatpush3.bf16.msra.mxu0 %v848_v38 }
  0xb7   :  { %853 = vmatprep.subr.bf16.mxu0 %v852_v40 }
  0xba   :  { %855 = vmatpush3.bf16.msra.mxu0 %v852_v40 }
  0xbb   :  { %857 = vmatprep.subr.bf16.mxu0 %v856_v43 }
  0xbe   :  { %859 = vmatpush3.bf16.msra.mxu0 %v856_v43 }
 0x174   :  { %v693_v18 = vpop.f32.mrb[0].mxu0 }
 0x175   :  { %v209_v19 = vpop.f32.mrb[1].mxu0  ;;  %v215_v20 = vadd.f32 %v693_v18, %v126_v17 }
 0x176   :  { %v210_v21 = vadd.f32 %v209_v19, %v126_v17  ;;  %v346_v17 = vld [vmem:[#allocation5] sm:$0xff] }
 0x177   :  { %v221_v23 = vmul.f32 0.01, %v215_v20  ;;  %vm219_vm1 = vcmp.gt.f32.partialorder %v215_v20, 0.0 }
 0x178   :  { %v220_v22 = vmul.f32 0.01, %v210_v21  ;;  %vm218_vm0 = vcmp.gt.f32.partialorder %v210_v21, 0.0 }
 0x179   :  { %v223_v25 = vsel %vm219_vm1, %v215_v20, %v221_v23  ;;  %v347_v20 = vld [vmem:[#allocation5 + $0x8] sm:$0xff] }
 0x17a   :  { %v222_v24 = vsel %vm218_vm0, %v210_v21, %v220_v22 }
 0x17b   :  { %334 = vmatmul.mubr.f32.vlgmr.msra.gmra.mrb[0].mxu1 %v222_v24 }
 0x17c   :  { %339 = vmatprep.mubr.f32.mxu1 %v1154_v10  ;;  %863 = vmatpush3.bf16.msra.mxu1 %v860_v47 }
 0x17d   :  { %865 = vmatprep.subr.bf16.mxu1 %v864_v49 }
 0x17f   :  { %340 = vmatmul.mubr.f32.gmra.mrb[2].mxu1 %v223_v25  ;;  %v469_v25 = vld [vmem:[#allocation13 + $0x60] sm:$0xff] }
 0x180   :  { %867 = vmatpush3.bf16.msra.mxu1 %v864_v49  ;;  %v884_v27 = vpack.c.bf16 %v470_v26, %v469_v25 }
 0x181   :  { %869 = vmatprep.subr.bf16.mxu1 %v868_v52 }
 0x184   :  { %871 = vmatpush3.bf16.msra.mxu1 %v868_v52 }
 0x185   :  { %873 = vmatprep.subr.bf16.mxu1 %v872_v55 }
 0x188   :  { %875 = vmatpush3.bf16.msra.mxu1 %v872_v55 }
 0x189   :  { %877 = vmatprep.subr.bf16.mxu1 %v876_v58 }
 0x18c   :  { %879 = vmatpush3.bf16.msra.mxu1 %v876_v58 }
 0x18d   :  { %881 = vmatprep.subr.bf16.mxu1 %v880_v61 }
 0x190   :  { %883 = vmatpush3.bf16.msra.mxu1 %v880_v61 }
 0x191   :  { %885 = vmatprep.subr.bf16.mxu1 %v884_v27 }
 0x194   :  { %887 = vmatpush3.bf16.msra.mxu1 %v884_v27 }
 0x195   :  { %889 = vmatprep.subr.bf16.mxu1 %v888_v30 }
 0x198   :  { %891 = vmatpush3.bf16.msra.mxu1 %v888_v30 }
 0x24e   :  { %v335_v5 = vpop.f32.mrb[0].mxu1 }
 0x24f   :  { %v336_v6 = vadd.f32 %v335_v5, %v262_v3  ;;  %v337_v7 = vpop.f32.mrb[1].mxu1 }
 0x250   :  { %v338_v8 = vadd.f32 %v337_v7, %v266_v4 }
 0x251   :  { %550 = vst [vmem:[#allocation15] sm:$0xff] %v336_v6 }
 0x252   :  { %v348_v9 = vmul.f32 0.5, %v338_v8  ;;  %552 = vst [vmem:[#allocation17] sm:$0xff] %v338_v8  ;;  %v341_v10 = vpop.f32.mrb[2].mxu1 }
 0x253   :  { %v342_v11 = vadd.f32 %v341_v10, %v262_v3  ;;  %v343_v12 = vpop.f32.mrb[3].mxu1 }
 0x254   :  { %v350_v13 = vmul.f32 1.442695, %v348_v9  ;;  %v344_v14 = vadd.f32 %v343_v12, %v266_v4 }
 0x255   :  { %551 = vst [vmem:[#allocation15 + $0x8] sm:$0xff] %v342_v11 }
 0x256   :  { %907 = vpow2.f32 %v350_v13  ;;  %v349_v15 = vmul.f32 0.5, %v344_v14  ;;  %553 = vst [vmem:[#allocation17 + $0x8] sm:$0xff] %v344_v14 }
 0x258   :  { %v352_v16 = vmul.f32 1.442695, %v349_v15 }
 0x25a   :  { %909 = vpow2.f32 %v352_v16 }
 0x260   :  { %v908_v18 = vpop.eup %907 }
 0x261   :  { %v354_v19 = vmul.f32 %v908_v18, %v346_v17 }
 0x263   :  { %v356_v21 = vadd.f32 %v354_v19, %v336_v6 }
 0x264   :  { %v910_v22 = vpop.eup %909 }
 0x265   :  { %726 = vmatprep.mubr.f32.mxu0 %v356_v21  ;;  %v355_v23 = vmul.f32 %v910_v22, %v347_v20 }
 0x267   :  { %v357_v24 = vadd.f32 %v355_v23, %v342_v11 }
 0x269   :  { %727 = vmatmul.mubr.f32.vlgmr.msra.gmra.mrb[2].mxu0 %v357_v24 }
 0x33c   :  { %v728_v32 = vpop.f32.mrb[2].mxu0 }
 0x33d   :  { %v447_v33 = vadd.f32 %v728_v32, %v358_v31  ;;  %v441_v34 = vpop.f32.mrb[3].mxu0 }
 0x33e   :  { %v442_v35 = vadd.f32 %v441_v34, %v358_v31 }
 0x33f   :  { %v453_v36 = vmul.f32 0.01, %v447_v33  ;;  %vm451_vm2 = vcmp.gt.f32.partialorder %v447_v33, 0.0 }
 0x340   :  { %v452_v37 = vmul.f32 0.01, %v442_v35  ;;  %vm450_vm3 = vcmp.gt.f32.partialorder %v442_v35, 0.0 }
 0x341   :  { %v455_v39 = vsel %vm451_vm2, %v447_v33, %v453_v36 }
 0x342   :  { %v454_v38 = vsel %vm450_vm3, %v442_v35, %v452_v37 }
 0x343   :  { %761 = vmatprep.mubr.f32.mxu1 %v454_v38 }
 0x344   :  { %762 = vmatmul.mubr.f32.vlgmr.msra.gmra.mrb[4].mxu1 %v455_v39 }
 0x345   :  { %1076 = shalt.err (!%p1073_p4)
}
 0x346   :  { %s1077_s13 = scalar_lea.hbm %s1381_s8, 256 }
 0x347   :  { %p1078_p5 = scmp.ne.s32.totalorder %s1381_s8, %s1077_s13  ;;  %p1081_p6 = scmp.lt.u32.totalorder %s1077_s13, %s1381_s8 }
 0x349   :  { %p1083_p7 = pnand %p1081_p6, %p1078_p5 }
 0x34b   :  { %1086 = shalt.err (!%p1083_p7)
}
 0x34c   :  { %577 = dma.vmem_to_hbm [thread:$0]  %s572_s28, 256, %s1381_s8, [#allocation16], %s1145_s21, %s1145_s21, %s1146_s22  }
 0x34d   :  { %s1156_s16 = smov [#allocation17]  }
 0x34e   :  { %s583_s18 = sshll.u32 %s1156_s16, 4  ;;  %s584_s18 = int_to_ptr.vmem [resolvable:$true] %s583_s18 }
 0x34f   :  { %s1087_s19 = scalar_lea.vmem %s584_s18, 256  ;;  %p1092_p9 = scmp.lt.s32.totalorder %s584_s18, %s584_s18 }
 0x350   :  { %p1088_p8 = scmp.ne.s32.totalorder %s584_s18, %s1087_s19  ;;  %p1093_p10 = scmp.lt.s32.totalorder %s1087_s19, %s1087_s19 }
 0x352   :  { %p1094_p11 = por %p1093_p10, %p1092_p9 }
 0x354   :  { %p1095_p12 = pnand %p1094_p11, %p1088_p8 }
 0x356   :  { %1098 = shalt.err (!%p1095_p12)
}
 0x357   :  { %s1099_s25 = scalar_lea.hbm %s1382_s9, 256 }
 0x358   :  { %p1100_p13 = scmp.ne.s32.totalorder %s1382_s9, %s1099_s25  ;;  %p1103_p0 = scmp.lt.u32.totalorder %s1099_s25, %s1382_s9 }
 0x35a   :  { %p1105_p1 = pnand %p1103_p0, %p1100_p13 }
 0x35c   :  { %1108 = shalt.err (!%p1105_p1)
}
 0x35d   :  { %589 = dma.vmem_to_hbm [thread:$0]  %s584_s18, 256, %s1382_s9, [#allocation16], %s1145_s21, %s1145_s21, %s1146_s22   ;;  %v456_v40 = vld [vmem:[#allocation7 + $0x3] ss:$0 sm:$0xff] }
 0x35e   :  { %s1157_s17 = smov [#allocation14]  }
 0x35f   :  { %s559_s4 = sshll.u32 %s1157_s17, 4  ;;  %s560_s4 = int_to_ptr.vmem [resolvable:$true] %s559_s4 }
 0x360   :  { %s1109_s20 = scalar_lea.vmem %s560_s4, 256  ;;  %p1114_p3 = scmp.lt.s32.totalorder %s560_s4, %s560_s4 }
 0x361   :  { %p1110_p2 = scmp.ne.s32.totalorder %s560_s4, %s1109_s20  ;;  %p1115_p4 = scmp.lt.s32.totalorder %s1109_s20, %s1109_s20 }
 0x363   :  { %p1116_p5 = por %p1115_p4, %p1114_p3 }
 0x365   :  { %p1117_p6 = pnand %p1116_p5, %p1110_p2 }
 0x417   :  { %v763_v41 = vpop.f32.mrb[4].mxu1 }
 0x418   :  { %v545_v42 = vadd.f32 %v763_v41, %v456_v40  ;;  %v539_v43 = vpop.f32.mrb[5].mxu1 }
 0x419   :  { %v540_v44 = vadd.f32 %v539_v43, %v456_v40 }
 0x41a   :  { %549 = vst [vmem:[#allocation14 + $0x8] sm:$0xff] %v545_v42 }
 0x41b   :  { %548 = vst [vmem:[#allocation14] sm:$0xff] %v540_v44 }
 0x41c   :  { %1120 = shalt.err (!%p1117_p6)
}
 0x41d   :  { %s1121_s9 = scalar_lea.hbm %s1380_s7, 256 }
 0x41e   :  { %p1122_p7 = scmp.ne.s32.totalorder %s1380_s7, %s1121_s9  ;;  %p1125_p8 = scmp.lt.u32.totalorder %s1121_s9, %s1380_s7 }
 0x420   :  { %p1127_p9 = pnand %p1125_p8, %p1122_p7 }
 0x422   :  { %1130 = shalt.err (!%p1127_p9)
}
 0x423   :  { %565 = dma.vmem_to_hbm [thread:$0]  %s560_s4, 256, %s1380_s7, [#allocation4], %s1145_s21, %s1145_s21, %s1146_s22  }
 0x424   :  { %1139 = dma.done.wait [#allocation4], 256  }
 0x425   :  { %1140 = vsyncadd [#allocation4], 4294967040 }
 0x426   :  { %1141 = dma.done.wait [#allocation16], 512  }
 0x427   :  { %1142 = vsyncadd [#allocation16], 4294966784 }
 0x428   :  { %599 = vsyncpa [#allocation3], 1 }
 0x429   :  { %600 = vsyncpa [#allocation6], 1 }
 0x42a   :  { %601 = vsyncpa [#allocation9], 1 }
 0x42b   :  { %602 = vsyncpa [#allocation12], 1 }
 0x42c   :  { %603 = vsyncpa [#allocation4], 1 }
 0x42d   :  { %604 = vsyncpa [#allocation16], 1 }

// kernel: tpu_custom_call.1
= control target key start
LH: loop header
LB: loop body
LE: loop exit
PB: predicated region body
PF: predicated region fallthrough
CT: control target
= control target key end

     0   :  { %15 = vsyncpa [#allocation3], 0  ;;  %s1373_s0 = inlined_call_operand.hbm [shape: f32[16,128], index: 0, kind: input, shape index: {}]   ;;  %s1374_s1 = inlined_call_operand.hbm [shape: f32[16,128], index: 1, kind: input, shape index: {}]   ;;  %s1375_s2 = inlined_call_operand.hbm [shape: f32[8,256], index: 2, kind: input, shape index: {}]   ;;  %s1376_s3 = inlined_call_operand.hbm [shape: f32[128,128], index: 3, kind: input, shape index: {}]   ;;  %s1377_s4 = inlined_call_operand.hbm [shape: f32[128,256], index: 4, kind: input, shape index: {}]   ;;  %s1378_s5 = inlined_call_operand.hbm [shape: f32[128,128], index: 5, kind: input, shape index: {}]   ;;  %s1379_s6 = inlined_call_operand.hbm [shape: f32[128,128], index: 6, kind: input, shape index: {}]   ;;  %s1380_s7 = inlined_call_operand.hbm [shape: f32[16,128], index: 7, kind: output, shape index: {0}]   ;;  %s1381_s8 = inlined_call_operand.hbm [shape: f32[16,128], index: 8, kind: output, shape index: {1}]   ;;  %s1382_s9 = inlined_call_operand.hbm [shape: f32[16,128], index: 9, kind: output, shape index: {2}]  }
   0x1   :  { %16 = vsyncpa [#allocation6], 0 }
   0x2   :  { %17 = vsyncpa [#allocation9], 0 }
   0x3   :  { %18 = vsyncpa [#allocation12], 0 }
   0x4   :  { %19 = vsyncpa [#allocation4], 0 }
   0x5   :  { %20 = vsyncpa [#allocation16], 0  ;;  %s1143_s30 = smov [#allocation5]   ;;  %s1144_s11 = smov [#allocation8]  }
   0x6   :  { %s38_s10 = sshll.u32 %s1143_s30, 4  ;;  %s60_s12 = sshll.u32 %s1144_s11, 4  ;;  %s39_s10 = int_to_ptr.vmem [resolvable:$true] %s38_s10  ;;  %s1208_s12 = int_to_ptr.vmem [resolvable:$true] %s60_s12 }
   0x7   :  { %s911_s15 = scalar_lea.hbm %s1374_s1, 256 }
   0x8   :  { %p912_p0 = scmp.ne.s32.totalorder %s1374_s1, %s911_s15  ;;  %p915_p1 = scmp.lt.u32.totalorder %s911_s15, %s1374_s1 }
   0xa   :  { %p917_p2 = pnand %p915_p1, %p912_p0 }
   0xc   :  { %920 = shalt.err (!%p917_p2)
}
   0xd   :  { %s921_s20 = scalar_lea.vmem %s39_s10, 256  ;;  %p926_p4 = scmp.lt.s32.totalorder %s39_s10, %s39_s10 }
   0xe   :  { %p922_p3 = scmp.ne.s32.totalorder %s39_s10, %s921_s20  ;;  %p927_p5 = scmp.lt.s32.totalorder %s921_s20, %s921_s20 }
  0x10   :  { %p928_p6 = por %p927_p5, %p926_p4 }
  0x12   :  { %p929_p7 = pnand %p928_p6, %p922_p3 }
  0x14   :  { %932 = shalt.err (!%p929_p7)
}
  0x15   :  { %s1145_s21 = smov 128   ;;  %s1146_s22 = smov 8  }
  0x16   :  { %44 = dma.hbm_to_vmem [thread:$0]  %s1374_s1, 256, %s39_s10, [#allocation6], %s1145_s21, %s1145_s21, %s1146_s22  }
  0x17   :  { %s933_s27 = scalar_lea.hbm %s1376_s3, 2048 }
  0x18   :  { %p934_p8 = scmp.ne.s32.totalorder %s1376_s3, %s933_s27  ;;  %p937_p9 = scmp.lt.u32.totalorder %s933_s27, %s1376_s3 }
  0x1a   :  { %p939_p10 = pnand %p937_p9, %p934_p8 }
  0x1c   :  { %942 = shalt.err (!%p939_p10)
}
  0x1d   :  { %s943_s13 = scalar_lea.vmem %s1208_s12, 2048  ;;  %p948_p12 = scmp.lt.s32.totalorder %s1208_s12, %s1208_s12 }
  0x1e   :  { %p944_p11 = scmp.ne.s32.totalorder %s1208_s12, %s943_s13  ;;  %p949_p13 = scmp.lt.s32.totalorder %s943_s13, %s943_s13 }
  0x20   :  { %p950_p0 = por %p949_p13, %p948_p12 }
  0x22   :  { %p951_p1 = pnand %p950_p0, %p944_p11 }
  0x24   :  { %954 = shalt.err (!%p951_p1)
}
  0x25   :  { %66 = dma.hbm_to_vmem [thread:$0]  %s1376_s3, 2048, %s1208_s12, [#allocation9], %s1145_s21, %s1145_s21, %s1146_s22  }
  0x26   :  { %s1147_s14 = smov [#allocation11]   ;;  %s1148_s16 = smov [#allocation2]  }
  0x27   :  { %s84_s15 = sshll.u32 %s1147_s14, 4  ;;  %s26_s17 = sshll.u32 %s1148_s16, 4  ;;  %s85_s15 = int_to_ptr.vmem [resolvable:$true] %s84_s15  ;;  %s1245_s17 = int_to_ptr.vmem [resolvable:$true] %s26_s17 }
  0x28   :  { %s955_s20 = scalar_lea.hbm %s1378_s5, 2048 }
  0x29   :  { %p956_p2 = scmp.ne.s32.totalorder %s1378_s5, %s955_s20  ;;  %p959_p3 = scmp.lt.u32.totalorder %s955_s20, %s1378_s5 }
  0x2b   :  { %p961_p4 = pnand %p959_p3, %p956_p2 }
  0x2d   :  { %964 = shalt.err (!%p961_p4)
}
  0x2e   :  { %s965_s3 = scalar_lea.vmem %s85_s15, 2048  ;;  %p970_p6 = scmp.lt.s32.totalorder %s85_s15, %s85_s15 }
  0x2f   :  { %p966_p5 = scmp.ne.s32.totalorder %s85_s15, %s965_s3  ;;  %p971_p7 = scmp.lt.s32.totalorder %s965_s3, %s965_s3 }
  0x31   :  { %p972_p8 = por %p971_p7, %p970_p6 }
  0x33   :  { %p973_p9 = pnand %p972_p8, %p966_p5 }
  0x35   :  { %976 = shalt.err (!%p973_p9)
}
  0x36   :  { %90 = dma.hbm_to_vmem [thread:$0]  %s1378_s5, 2048, %s85_s15, [#allocation12], %s1145_s21, %s1145_s21, %s1146_s22  }
  0x37   :  { %s977_s30 = scalar_lea.hbm %s1373_s0, 256 }
  0x38   :  { %p978_p10 = scmp.ne.s32.totalorder %s1373_s0, %s977_s30  ;;  %p981_p11 = scmp.lt.u32.totalorder %s977_s30, %s1373_s0 }
  0x3a   :  { %p983_p12 = pnand %p981_p11, %p978_p10 }
  0x3c   :  { %986 = shalt.err (!%p983_p12)
}
  0x3d   :  { %s987_s14 = scalar_lea.vmem %s1245_s17, 256  ;;  %p992_p0 = scmp.lt.s32.totalorder %s1245_s17, %s1245_s17 }
  0x3e   :  { %p988_p13 = scmp.ne.s32.totalorder %s1245_s17, %s987_s14  ;;  %p993_p1 = scmp.lt.s32.totalorder %s987_s14, %s987_s14 }
  0x40   :  { %p994_p2 = por %p993_p1, %p992_p0 }
  0x42   :  { %p995_p3 = pnand %p994_p2, %p988_p13 }
  0x44   :  { %998 = shalt.err (!%p995_p3)
}
  0x45   :  { %32 = dma.hbm_to_vmem [thread:$0]  %s1373_s0, 256, %s1245_s17, [#allocation3], %s1145_s21, %s1145_s21, %s1146_s22  }
  0x46   :  { %s1149_s16 = smov [#allocation7]   ;;  %s1150_s19 = smov [#allocation10]  }
  0x47   :  { %s51_s18 = sshll.u32 %s1149_s16, 4  ;;  %s72_s20 = sshll.u32 %s1150_s19, 4  ;;  %s52_s18 = int_to_ptr.vmem [resolvable:$true] %s51_s18  ;;  %s1282_s20 = int_to_ptr.vmem [resolvable:$true] %s72_s20 }
  0x48   :  { %s999_s25 = scalar_lea.hbm %s1375_s2, 256 }
  0x49   :  { %p1000_p4 = scmp.ne.s32.totalorder %s1375_s2, %s999_s25  ;;  %p1003_p5 = scmp.lt.u32.totalorder %s999_s25, %s1375_s2 }
  0x4b   :  { %p1005_p6 = pnand %p1003_p5, %p1000_p4 }
  0x4d   :  { %1008 = shalt.err (!%p1005_p6)
}
  0x4e   :  { %s1009_s0 = scalar_lea.vmem %s52_s18, 256  ;;  %p1014_p8 = scmp.lt.s32.totalorder %s52_s18, %s52_s18 }
  0x4f   :  { %p1010_p7 = scmp.ne.s32.totalorder %s52_s18, %s1009_s0  ;;  %p1015_p9 = scmp.lt.s32.totalorder %s1009_s0, %s1009_s0 }
  0x51   :  { %p1016_p10 = por %p1015_p9, %p1014_p8 }
  0x53   :  { %p1017_p11 = pnand %p1016_p10, %p1010_p7 }
  0x55   :  { %1020 = shalt.err (!%p1017_p11)
}
  0x56   :  { %54 = dma.hbm_to_vmem [thread:$0]  %s1375_s2, 256, %s52_s18, [#allocation6]  }
  0x57   :  { %s1021_s11 = scalar_lea.hbm %s1377_s4, 4096 }
  0x58   :  { %p1022_p12 = scmp.ne.s32.totalorder %s1377_s4, %s1021_s11  ;;  %p1025_p13 = scmp.lt.u32.totalorder %s1021_s11, %s1377_s4 }
  0x5a   :  { %p1027_p0 = pnand %p1025_p13, %p1022_p12 }
  0x5c   :  { %1030 = shalt.err (!%p1027_p0)
}
  0x5d   :  { %s1031_s5 = scalar_lea.vmem %s1282_s20, 4096  ;;  %p1036_p2 = scmp.lt.s32.totalorder %s1282_s20, %s1282_s20 }
  0x5e   :  { %p1032_p1 = scmp.ne.s32.totalorder %s1282_s20, %s1031_s5  ;;  %p1037_p3 = scmp.lt.s32.totalorder %s1031_s5, %s1031_s5 }
  0x60   :  { %p1038_p4 = por %p1037_p3, %p1036_p2 }
  0x62   :  { %p1039_p5 = pnand %p1038_p4, %p1032_p1 }
  0x64   :  { %1042 = shalt.err (!%p1039_p5)
}
  0x65   :  { %s1151_s2 = smov 256   ;;  %s1152_s15 = smov 16  }
  0x66   :  { %78 = dma.hbm_to_vmem [thread:$0]  %s1377_s4, 4096, %s1282_s20, [#allocation9], %s1151_s2, %s1151_s2, %s1152_s15  }
  0x67   :  { %s1153_s19 = smov [#allocation13]   ;;  %s1043_s26 = scalar_lea.hbm %s1379_s6, 2048 }
  0x68   :  { %s96_s23 = sshll.u32 %s1153_s19, 4  ;;  %p1044_p6 = scmp.ne.s32.totalorder %s1379_s6, %s1043_s26  ;;  %s97_s23 = int_to_ptr.vmem [resolvable:$true] %s96_s23 }
  0x69   :  { %p1047_p7 = scmp.lt.u32.totalorder %s1043_s26, %s1379_s6 }
  0x6b   :  { %p1049_p8 = pnand %p1047_p7, %p1044_p6 }
  0x6d   :  { %1052 = shalt.err (!%p1049_p8)
}
  0x6e   :  { %s1053_s17 = scalar_lea.vmem %s97_s23, 2048  ;;  %p1058_p10 = scmp.lt.s32.totalorder %s97_s23, %s97_s23 }
  0x6f   :  { %p1054_p9 = scmp.ne.s32.totalorder %s97_s23, %s1053_s17  ;;  %p1059_p11 = scmp.lt.s32.totalorder %s1053_s17, %s1053_s17 }
  0x71   :  { %p1060_p12 = por %p1059_p11, %p1058_p10 }
  0x73   :  { %p1061_p13 = pnand %p1060_p12, %p1054_p9 }
  0x75   :  { %1064 = shalt.err (!%p1061_p13)
}
  0x76   :  { %102 = dma.hbm_to_vmem [thread:$0]  %s1379_s6, 2048, %s97_s23, [#allocation12], %s1145_s21, %s1145_s21, %s1146_s22  }
  0x77   :  { %1131 = dma.done.wait [#allocation3], 256  }
  0x78   :  { %1132 = vsyncadd [#allocation3], 4294967040 }
  0x79   :  { %1133 = dma.done.wait [#allocation6], 512  }
  0x7a   :  { %1134 = vsyncadd [#allocation6], 4294966784 }
  0x7b   :  { %1135 = dma.done.wait [#allocation9], 6144  }
  0x7c   :  { %1136 = vsyncadd [#allocation9], 4294961152 }
  0x7d   :  { %1137 = dma.done.wait [#allocation12], 4096  }
  0x7e   :  { %1138 = vsyncadd [#allocation12], 4294963200  ;;  %v127_v0 = vld [vmem:[#allocation8] sm:$0xff]  ;;  %v128_v1 = vld [vmem:[#allocation8 + $0x8] sm:$0xff]  ;;  %s1155_s6 = smov [#allocation15]  }
  0x7f   :  { %v129_v2 = vld [vmem:[#allocation8 + $0x10] sm:$0xff]  ;;  %v764_v3 = vpack.c.bf16 %v128_v1, %v127_v0  ;;  %v130_v4 = vld [vmem:[#allocation8 + $0x18] sm:$0xff]  ;;  %v131_v6 = vld [vmem:[#allocation8 + $0x20] sm:$0xff]  ;;  %s571_s28 = sshll.u32 %s1155_s6, 4  ;;  %s572_s28 = int_to_ptr.vmem [resolvable:$true] %s571_s28 }
  0x80   :  { %v768_v5 = vpack.c.bf16 %v130_v4, %v129_v2  ;;  %v132_v7 = vld [vmem:[#allocation8 + $0x28] sm:$0xff]  ;;  %v133_v9 = vld [vmem:[#allocation8 + $0x30] sm:$0xff]  ;;  %v134_v10 = vld [vmem:[#allocation8 + $0x38] sm:$0xff]  ;;  %s1065_s29 = scalar_lea.vmem %s572_s28, 256  ;;  %p1070_p1 = scmp.lt.s32.totalorder %s572_s28, %s572_s28 }
  0x81   :  { %765 = vmatprep.subr.bf16.mxu0 %v764_v3  ;;  %v772_v8 = vpack.c.bf16 %v132_v7, %v131_v6  ;;  %v124_v11 = vld [vmem:[#allocation2] sm:$0xff]  ;;  %v227_v12 = vld [vmem:[#allocation10 + $0x8] sm:$0xff]  ;;  %v229_v13 = vld [vmem:[#allocation10 + $0x18] sm:$0xff]  ;;  %v776_v24 = vpack.c.bf16 %v134_v10, %v133_v9  ;;  %v1154_v10 = vmov 0.0   ;;  %p1066_p0 = scmp.ne.s32.totalorder %s572_s28, %s1065_s29  ;;  %p1071_p2 = scmp.lt.s32.totalorder %s1065_s29, %s1065_s29 }
  0x82   :  { %767 = vmatpush3.bf16.msra.mxu0 %v764_v3  ;;  %691 = vmatprep.mubr.f32.mxu0 %v124_v11  ;;  %v226_v14 = vld [vmem:[#allocation10] sm:$0xff]  ;;  %v796_v15 = vpack.c.bf16 %v229_v13, %v227_v12  ;;  %v228_v16 = vld [vmem:[#allocation10 + $0x10] sm:$0xff]  ;;  %v231_v17 = vld [vmem:[#allocation10 + $0x28] sm:$0xff] }
  0x83   :  { %769 = vmatprep.subr.bf16.mxu0 %v768_v5  ;;  %v233_v18 = vld [vmem:[#allocation10 + $0x38] sm:$0xff]  ;;  %v798_v19 = vpack.c.bf16 %v228_v16, %v226_v14  ;;  %v230_v21 = vld [vmem:[#allocation10 + $0x20] sm:$0xff]  ;;  %v232_v22 = vld [vmem:[#allocation10 + $0x30] sm:$0xff]  ;;  %333 = vmatprep.mubr.f32.mxu1 %v1154_v10  ;;  %p1072_p3 = por %p1071_p2, %p1070_p1 }
  0x84   :  { %v800_v20 = vpack.c.bf16 %v233_v18, %v231_v17  ;;  %v235_v23 = vld [vmem:[#allocation10 + $0x48] sm:$0xff]  ;;  %797 = vmatprep.subr.bf16.mxu1 %v796_v15  ;;  %v237_v25 = vld [vmem:[#allocation10 + $0x58] sm:$0xff]  ;;  %v135_v26 = vld [vmem:[#allocation8 + $0x40] sm:$0xff]  ;;  %v802_v28 = vpack.c.bf16 %v232_v22, %v230_v21 }
  0x85   :  { %v136_v27 = vld [vmem:[#allocation8 + $0x48] sm:$0xff]  ;;  %799 = vmatpush1.bf16.msra.mxu1 %v798_v19  ;;  %v804_v29 = vpack.c.bf16 %v237_v25, %v235_v23  ;;  %v234_v30 = vld [vmem:[#allocation10 + $0x40] sm:$0xff]  ;;  %v236_v31 = vld [vmem:[#allocation10 + $0x50] sm:$0xff]  ;;  %p1073_p4 = pnand %p1072_p3, %p1066_p0 }
  0x86   :  { %771 = vmatpush3.bf16.msra.mxu0 %v768_v5  ;;  %801 = vmatprep.subr.bf16.mxu1 %v800_v20  ;;  %v239_v32 = vld [vmem:[#allocation10 + $0x68] sm:$0xff]  ;;  %v241_v33 = vld [vmem:[#allocation10 + $0x78] sm:$0xff]  ;;  %v780_v34 = vpack.c.bf16 %v136_v27, %v135_v26  ;;  %v137_v35 = vld [vmem:[#allocation8 + $0x50] sm:$0xff]  ;;  %v806_v37 = vpack.c.bf16 %v236_v31, %v234_v30 }
  0x87   :  { %773 = vmatprep.subr.bf16.mxu0 %v772_v8  ;;  %v138_v36 = vld [vmem:[#allocation8 + $0x58] sm:$0xff]  ;;  %v808_v38 = vpack.c.bf16 %v241_v33, %v239_v32  ;;  %v238_v39 = vld [vmem:[#allocation10 + $0x60] sm:$0xff]  ;;  %v240_v40 = vld [vmem:[#allocation10 + $0x70] sm:$0xff] }
  0x88   :  { %v243_v41 = vld [vmem:[#allocation10 + $0x88] sm:$0xff]  ;;  %v245_v42 = vld [vmem:[#allocation10 + $0x98] sm:$0xff]  ;;  %v784_v43 = vpack.c.bf16 %v138_v36, %v137_v35  ;;  %v139_v44 = vld [vmem:[#allocation8 + $0x60] sm:$0xff]  ;;  %v810_v46 = vpack.c.bf16 %v240_v40, %v238_v39 }
  0x89   :  { %803 = vmatpush1.bf16.msra.mxu1 %v802_v28  ;;  %v140_v45 = vld [vmem:[#allocation8 + $0x68] sm:$0xff]  ;;  %v812_v47 = vpack.c.bf16 %v245_v42, %v243_v41  ;;  %v242_v48 = vld [vmem:[#allocation10 + $0x80] sm:$0xff]  ;;  %v244_v49 = vld [vmem:[#allocation10 + $0x90] sm:$0xff] }
  0x8a   :  { %775 = vmatpush3.bf16.msra.mxu0 %v772_v8  ;;  %805 = vmatprep.subr.bf16.mxu1 %v804_v29  ;;  %v247_v50 = vld [vmem:[#allocation10 + $0xa8] sm:$0xff]  ;;  %v249_v51 = vld [vmem:[#allocation10 + $0xb8] sm:$0xff]  ;;  %v788_v52 = vpack.c.bf16 %v140_v45, %v139_v44  ;;  %v141_v53 = vld [vmem:[#allocation8 + $0x70] sm:$0xff]  ;;  %v814_v55 = vpack.c.bf16 %v244_v49, %v242_v48 }
  0x8b   :  { %777 = vmatprep.subr.bf16.mxu0 %v776_v24  ;;  %v142_v54 = vld [vmem:[#allocation8 + $0x78] sm:$0xff]  ;;  %v816_v56 = vpack.c.bf16 %v249_v51, %v247_v50  ;;  %v246_v57 = vld [vmem:[#allocation10 + $0xa0] sm:$0xff]  ;;  %v248_v58 = vld [vmem:[#allocation10 + $0xb0] sm:$0xff] }
  0x8c   :  { %v251_v59 = vld [vmem:[#allocation10 + $0xc8] sm:$0xff]  ;;  %v253_v60 = vld [vmem:[#allocation10 + $0xd8] sm:$0xff]  ;;  %v792_v61 = vpack.c.bf16 %v142_v54, %v141_v53  ;;  %v818_v62 = vpack.c.bf16 %v248_v58, %v246_v57  ;;  %v250_v1 = vld [vmem:[#allocation10 + $0xc0] sm:$0xff] }
  0x8d   :  { %807 = vmatpush1.bf16.msra.mxu1 %v806_v37  ;;  %v820_v63 = vpack.c.bf16 %v253_v60, %v251_v59  ;;  %v125_v0 = vld [vmem:[#allocation2 + $0x8] sm:$0xff]  ;;  %v252_v2 = vld [vmem:[#allocation10 + $0xd0] sm:$0xff]  ;;  %v255_v4 = vld [vmem:[#allocation10 + $0xe8] sm:$0xff] }
  0x8e   :  { %779 = vmatpush3.bf16.msra.mxu0 %v776_v24  ;;  %809 = vmatprep.subr.bf16.mxu1 %v808_v38  ;;  %v822_v3 = vpack.c.bf16 %v252_v2, %v250_v1  ;;  %v257_v5 = vld [vmem:[#allocation10 + $0xf8] sm:$0xff]  ;;  %v254_v7 = vld [vmem:[#allocation10 + $0xe0] sm:$0xff]  ;;  %v256_v8 = vld [vmem:[#allocation10 + $0xf0] sm:$0xff] }
  0x8f   :  { %781 = vmatprep.subr.bf16.mxu0 %v780_v34  ;;  %v824_v6 = vpack.c.bf16 %v257_v5, %v255_v4  ;;  %v826_v9 = vpack.c.bf16 %v256_v8, %v254_v7  ;;  %v359_v11 = vld [vmem:[#allocation11] sm:$0xff]  ;;  %v360_v12 = vld [vmem:[#allocation11 + $0x8] sm:$0xff]  ;;  %v361_v13 = vld [vmem:[#allocation11 + $0x10] sm:$0xff] }
  0x90   :  { %v828_v14 = vpack.c.bf16 %v360_v12, %v359_v11  ;;  %v362_v15 = vld [vmem:[#allocation11 + $0x18] sm:$0xff]  ;;  %v126_v17 = vld [vmem:[#allocation7] ss:$0 sm:$0xff]  ;;  %v363_v26 = vld [vmem:[#allocation11 + $0x20] sm:$0xff] }
  0x91   :  { %811 = vmatpush1.bf16.msra.mxu1 %v810_v46  ;;  %v832_v16 = vpack.c.bf16 %v362_v15, %v361_v13  ;;  %v364_v27 = vld [vmem:[#allocation11 + $0x28] sm:$0xff]  ;;  %v365_v29 = vld [vmem:[#allocation11 + $0x30] sm:$0xff]  ;;  %v366_v30 = vld [vmem:[#allocation11 + $0x38] sm:$0xff] }
  0x92   :  { %783 = vmatpush3.bf16.msra.mxu0 %v780_v34  ;;  %813 = vmatprep.subr.bf16.mxu1 %v812_v47  ;;  %v836_v28 = vpack.c.bf16 %v364_v27, %v363_v26  ;;  %v840_v31 = vpack.c.bf16 %v366_v30, %v365_v29  ;;  %v367_v32 = vld [vmem:[#allocation11 + $0x40] sm:$0xff]  ;;  %v368_v33 = vld [vmem:[#allocation11 + $0x48] sm:$0xff]  ;;  %v369_v35 = vld [vmem:[#allocation11 + $0x50] sm:$0xff] }
  0x93   :  { %785 = vmatprep.subr.bf16.mxu0 %v784_v43  ;;  %v844_v34 = vpack.c.bf16 %v368_v33, %v367_v32  ;;  %v370_v36 = vld [vmem:[#allocation11 + $0x58] sm:$0xff]  ;;  %v371_v37 = vld [vmem:[#allocation11 + $0x60] sm:$0xff]  ;;  %v372_v39 = vld [vmem:[#allocation11 + $0x68] sm:$0xff] }
  0x94   :  { %v848_v38 = vpack.c.bf16 %v370_v36, %v369_v35  ;;  %v852_v40 = vpack.c.bf16 %v372_v39, %v371_v37  ;;  %v373_v41 = vld [vmem:[#allocation11 + $0x70] sm:$0xff]  ;;  %v374_v42 = vld [vmem:[#allocation11 + $0x78] sm:$0xff]  ;;  %v457_v44 = vld [vmem:[#allocation13] sm:$0xff] }
  0x95   :  { %815 = vmatpush1.bf16.msra.mxu1 %v814_v55  ;;  %v458_v45 = vld [vmem:[#allocation13 + $0x8] sm:$0xff]  ;;  %v459_v46 = vld [vmem:[#allocation13 + $0x10] sm:$0xff]  ;;  %v460_v48 = vld [vmem:[#allocation13 + $0x18] sm:$0xff] }
  0x96   :  { %787 = vmatpush3.bf16.msra.mxu0 %v784_v43  ;;  %817 = vmatprep.subr.bf16.mxu1 %v816_v56  ;;  %v856_v43 = vpack.c.bf16 %v374_v42, %v373_v41  ;;  %v860_v47 = vpack.c.bf16 %v458_v45, %v457_v44  ;;  %v864_v49 = vpack.c.bf16 %v460_v48, %v459_v46  ;;  %v461_v50 = vld [vmem:[#allocation13 + $0x20] sm:$0xff]  ;;  %v462_v51 = vld [vmem:[#allocation13 + $0x28] sm:$0xff]  ;;  %v463_v53 = vld [vmem:[#allocation13 + $0x30] sm:$0xff] }
  0x97   :  { %789 = vmatprep.subr.bf16.mxu0 %v788_v52  ;;  %v464_v54 = vld [vmem:[#allocation13 + $0x38] sm:$0xff]  ;;  %v465_v56 = vld [vmem:[#allocation13 + $0x40] sm:$0xff]  ;;  %v466_v57 = vld [vmem:[#allocation13 + $0x48] sm:$0xff] }
  0x98   :  { %v872_v55 = vpack.c.bf16 %v464_v54, %v463_v53  ;;  %v876_v58 = vpack.c.bf16 %v466_v57, %v465_v56  ;;  %v467_v59 = vld [vmem:[#allocation13 + $0x50] sm:$0xff]  ;;  %v468_v60 = vld [vmem:[#allocation13 + $0x58] sm:$0xff]  ;;  %v470_v26 = vld [vmem:[#allocation13 + $0x68] sm:$0xff] }
  0x99   :  { %819 = vmatpush1.bf16.msra.mxu1 %v818_v62  ;;  %v259_v62 = vlaneseq  ;;  %v225_v1 = vld [vmem:[#allocation7 + $0x1] ss:$8 sm:$0x3] }
  0x9a   :  { %791 = vmatpush3.bf16.msra.mxu0 %v788_v52  ;;  %821 = vmatprep.subr.bf16.mxu1 %v820_v63  ;;  %v868_v52 = vpack.c.bf16 %v462_v51, %v461_v50  ;;  %v472_v29 = vld [vmem:[#allocation13 + $0x78] sm:$0xff] }
  0x9b   :  { %793 = vmatprep.subr.bf16.mxu0 %v792_v61  ;;  %v260_v63 = vshrl.u32 %v259_v62, 7 }
  0x9d   :  { %823 = vmatpush1.bf16.msra.mxu1 %v822_v3  ;;  %v265_v2 = vsub.s32 1, %v260_v63 }
  0x9e   :  { %795 = vmatpush3.bf16.msra.mxu0 %v792_v61  ;;  %825 = vmatprep.subr.bf16.mxu1 %v824_v6  ;;  %v880_v61 = vpack.c.bf16 %v468_v60, %v467_v59 }
  0x9f   :  { %829 = vmatprep.subr.bf16.mxu0 %v828_v14  ;;  %v266_v4 = vrot.slane %v225_v1, %v265_v2 }
  0xa1   :  { %692 = vmatmul.mubr.f32.vlgmr.msra.gmra.mrb[0].mxu0 %v125_v0  ;;  %827 = vmatpush1.bf16.msra.mxu1 %v826_v9  ;;  %v261_v0 = vsub.s32 0, %v260_v63 }
  0xa2   :  { %831 = vmatpush3.bf16.msra.mxu0 %v828_v14  ;;  %861 = vmatprep.subr.bf16.mxu1 %v860_v47 }
  0xa3   :  { %833 = vmatprep.subr.bf16.mxu0 %v832_v16  ;;  %v262_v3 = vrot.slane %v225_v1, %v261_v0 }
  0xa6   :  { %835 = vmatpush3.bf16.msra.mxu0 %v832_v16 }
  0xa7   :  { %837 = vmatprep.subr.bf16.mxu0 %v836_v28 }
  0xaa   :  { %839 = vmatpush3.bf16.msra.mxu0 %v836_v28  ;;  %v471_v28 = vld [vmem:[#allocation13 + $0x70] sm:$0xff] }
  0xab   :  { %841 = vmatprep.subr.bf16.mxu0 %v840_v31  ;;  %v888_v30 = vpack.c.bf16 %v472_v29, %v471_v28 }
  0xae   :  { %843 = vmatpush3.bf16.msra.mxu0 %v840_v31  ;;  %v358_v31 = vld [vmem:[#allocation7 + $0x2] ss:$0 sm:$0xff] }
  0xaf   :  { %845 = vmatprep.subr.bf16.mxu0 %v844_v34 }
  0xb2   :  { %847 = vmatpush3.bf16.msra.mxu0 %v844_v34 }
  0xb3   :  { %849 = vmatprep.subr.bf16.mxu0 %v848_v38 }
  0xb6   :  { %851 = vmatpush3.bf16.msra.mxu0 %v848_v38 }
  0xb7   :  { %853 = vmatprep.subr.bf16.mxu0 %v852_v40 }
  0xba   :  { %855 = vmatpush3.bf16.msra.mxu0 %v852_v40 }
  0xbb   :  { %857 = vmatprep.subr.bf16.mxu0 %v856_v43 }
  0xbe   :  { %859 = vmatpush3.bf16.msra.mxu0 %v856_v43 }
 0x174   :  { %v693_v18 = vpop.f32.mrb[0].mxu0 }
 0x175   :  { %v209_v19 = vpop.f32.mrb[1].mxu0  ;;  %v215_v20 = vadd.f32 %v693_v18, %v126_v17 }
 0x176   :  { %v210_v21 = vadd.f32 %v209_v19, %v126_v17  ;;  %v346_v17 = vld [vmem:[#allocation5] sm:$0xff] }
 0x177   :  { %v221_v23 = vmul.f32 0.01, %v215_v20  ;;  %vm219_vm1 = vcmp.gt.f32.partialorder %v215_v20, 0.0 }
 0x178   :  { %v220_v22 = vmul.f32 0.01, %v210_v21  ;;  %vm218_vm0 = vcmp.gt.f32.partialorder %v210_v21, 0.0 }
 0x179   :  { %v223_v25 = vsel %vm219_vm1, %v215_v20, %v221_v23  ;;  %v347_v20 = vld [vmem:[#allocation5 + $0x8] sm:$0xff] }
 0x17a   :  { %v222_v24 = vsel %vm218_vm0, %v210_v21, %v220_v22 }
 0x17b   :  { %334 = vmatmul.mubr.f32.vlgmr.msra.gmra.mrb[0].mxu1 %v222_v24 }
 0x17c   :  { %339 = vmatprep.mubr.f32.mxu1 %v1154_v10  ;;  %863 = vmatpush3.bf16.msra.mxu1 %v860_v47 }
 0x17d   :  { %865 = vmatprep.subr.bf16.mxu1 %v864_v49 }
 0x17f   :  { %340 = vmatmul.mubr.f32.gmra.mrb[2].mxu1 %v223_v25  ;;  %v469_v25 = vld [vmem:[#allocation13 + $0x60] sm:$0xff] }
 0x180   :  { %867 = vmatpush3.bf16.msra.mxu1 %v864_v49  ;;  %v884_v27 = vpack.c.bf16 %v470_v26, %v469_v25 }
 0x181   :  { %869 = vmatprep.subr.bf16.mxu1 %v868_v52 }
 0x184   :  { %871 = vmatpush3.bf16.msra.mxu1 %v868_v52 }
 0x185   :  { %873 = vmatprep.subr.bf16.mxu1 %v872_v55 }
 0x188   :  { %875 = vmatpush3.bf16.msra.mxu1 %v872_v55 }
 0x189   :  { %877 = vmatprep.subr.bf16.mxu1 %v876_v58 }
 0x18c   :  { %879 = vmatpush3.bf16.msra.mxu1 %v876_v58 }
 0x18d   :  { %881 = vmatprep.subr.bf16.mxu1 %v880_v61 }
 0x190   :  { %883 = vmatpush3.bf16.msra.mxu1 %v880_v61 }
 0x191   :  { %885 = vmatprep.subr.bf16.mxu1 %v884_v27 }
 0x194   :  { %887 = vmatpush3.bf16.msra.mxu1 %v884_v27 }
 0x195   :  { %889 = vmatprep.subr.bf16.mxu1 %v888_v30 }
 0x198   :  { %891 = vmatpush3.bf16.msra.mxu1 %v888_v30 }
 0x24e   :  { %v335_v5 = vpop.f32.mrb[0].mxu1 }
 0x24f   :  { %v336_v6 = vadd.f32 %v335_v5, %v262_v3  ;;  %v337_v7 = vpop.f32.mrb[1].mxu1 }
 0x250   :  { %v338_v8 = vadd.f32 %v337_v7, %v266_v4 }
 0x251   :  { %550 = vst [vmem:[#allocation15] sm:$0xff] %v336_v6 }
 0x252   :  { %v348_v9 = vmul.f32 0.5, %v338_v8  ;;  %552 = vst [vmem:[#allocation17] sm:$0xff] %v338_v8  ;;  %v341_v10 = vpop.f32.mrb[2].mxu1 }
 0x253   :  { %v342_v11 = vadd.f32 %v341_v10, %v262_v3  ;;  %v343_v12 = vpop.f32.mrb[3].mxu1 }
 0x254   :  { %v350_v13 = vmul.f32 1.442695, %v348_v9  ;;  %v344_v14 = vadd.f32 %v343_v12, %v266_v4 }
 0x255   :  { %551 = vst [vmem:[#allocation15 + $0x8] sm:$0xff] %v342_v11 }
 0x256   :  { %907 = vpow2.f32 %v350_v13  ;;  %v349_v15 = vmul.f32 0.5, %v344_v14  ;;  %553 = vst [vmem:[#allocation17 + $0x8] sm:$0xff] %v344_v14 }
 0x258   :  { %v352_v16 = vmul.f32 1.442695, %v349_v15 }
 0x25a   :  { %909 = vpow2.f32 %v352_v16 }
 0x260   :  { %v908_v18 = vpop.eup %907 }
 0x261   :  { %v354_v19 = vmul.f32 %v908_v18, %v346_v17 }
 0x263   :  { %v356_v21 = vadd.f32 %v354_v19, %v336_v6 }
 0x264   :  { %v910_v22 = vpop.eup %909 }
 0x265   :  { %726 = vmatprep.mubr.f32.mxu0 %v356_v21  ;;  %v355_v23 = vmul.f32 %v910_v22, %v347_v20 }
 0x267   :  { %v357_v24 = vadd.f32 %v355_v23, %v342_v11 }
 0x269   :  { %727 = vmatmul.mubr.f32.vlgmr.msra.gmra.mrb[2].mxu0 %v357_v24 }
 0x33c   :  { %v728_v32 = vpop.f32.mrb[2].mxu0 }
 0x33d   :  { %v447_v33 = vadd.f32 %v728_v32, %v358_v31  ;;  %v441_v34 = vpop.f32.mrb[3].mxu0 }
 0x33e   :  { %v442_v35 = vadd.f32 %v441_v34, %v358_v31 }
 0x33f   :  { %v453_v36 = vmul.f32 0.01, %v447_v33  ;;  %vm451_vm2 = vcmp.gt.f32.partialorder %v447_v33, 0.0 }
 0x340   :  { %v452_v37 = vmul.f32 0.01, %v442_v35  ;;  %vm450_vm3 = vcmp.gt.f32.partialorder %v442_v35, 0.0 }
 0x341   :  { %v455_v39 = vsel %vm451_vm2, %v447_v33, %v453_v36 }
 0x342   :  { %v454_v38 = vsel %vm450_vm3, %v442_v35, %v452_v37 }
 0x343   :  { %761 = vmatprep.mubr.f32.mxu1 %v454_v38 }
 0x344   :  { %762 = vmatmul.mubr.f32.vlgmr.msra.gmra.mrb[4].mxu1 %v455_v39 }
 0x345   :  { %1076 = shalt.err (!%p1073_p4)
}
 0x346   :  { %s1077_s13 = scalar_lea.hbm %s1381_s8, 256 }
 0x347   :  { %p1078_p5 = scmp.ne.s32.totalorder %s1381_s8, %s1077_s13  ;;  %p1081_p6 = scmp.lt.u32.totalorder %s1077_s13, %s1381_s8 }
 0x349   :  { %p1083_p7 = pnand %p1081_p6, %p1078_p5 }
 0x34b   :  { %1086 = shalt.err (!%p1083_p7)
}
 0x34c   :  { %577 = dma.vmem_to_hbm [thread:$0]  %s572_s28, 256, %s1381_s8, [#allocation16], %s1145_s21, %s1145_s21, %s1146_s22  }
 0x34d   :  { %s1156_s16 = smov [#allocation17]  }
 0x34e   :  { %s583_s18 = sshll.u32 %s1156_s16, 4  ;;  %s584_s18 = int_to_ptr.vmem [resolvable:$true] %s583_s18 }
 0x34f   :  { %s1087_s19 = scalar_lea.vmem %s584_s18, 256  ;;  %p1092_p9 = scmp.lt.s32.totalorder %s584_s18, %s584_s18 }
 0x350   :  { %p1088_p8 = scmp.ne.s32.totalorder %s584_s18, %s1087_s19  ;;  %p1093_p10 = scmp.lt.s32.totalorder %s1087_s19, %s1087_s19 }
 0x352   :  { %p1094_p11 = por %p1093_p10, %p1092_p9 }
 0x354   :  { %p1095_p12 = pnand %p1094_p11, %p1088_p8 }
 0x356   :  { %1098 = shalt.err (!%p1095_p12)
}
 0x357   :  { %s1099_s25 = scalar_lea.hbm %s1382_s9, 256 }
 0x358   :  { %p1100_p13 = scmp.ne.s32.totalorder %s1382_s9, %s1099_s25  ;;  %p1103_p0 = scmp.lt.u32.totalorder %s1099_s25, %s1382_s9 }
 0x35a   :  { %p1105_p1 = pnand %p1103_p0, %p1100_p13 }
 0x35c   :  { %1108 = shalt.err (!%p1105_p1)
}
 0x35d   :  { %589 = dma.vmem_to_hbm [thread:$0]  %s584_s18, 256, %s1382_s9, [#allocation16], %s1145_s21, %s1145_s21, %s1146_s22   ;;  %v456_v40 = vld [vmem:[#allocation7 + $0x3] ss:$0 sm:$0xff] }
 0x35e   :  { %s1157_s17 = smov [#allocation14]  }
 0x35f   :  { %s559_s4 = sshll.u32 %s1157_s17, 4  ;;  %s560_s4 = int_to_ptr.vmem [resolvable:$true] %s559_s4 }
 0x360   :  { %s1109_s20 = scalar_lea.vmem %s560_s4, 256  ;;  %p1114_p3 = scmp.lt.s32.totalorder %s560_s4, %s560_s4 }
 0x361   :  { %p1110_p2 = scmp.ne.s32.totalorder %s560_s4, %s1109_s20  ;;  %p1115_p4 = scmp.lt.s32.totalorder %s1109_s20, %s1109_s20 }
 0x363   :  { %p1116_p5 = por %p1115_p4, %p1114_p3 }
 0x365   :  { %p1117_p6 = pnand %p1116_p5, %p1110_p2 }
 0x417   :  { %v763_v41 = vpop.f32.mrb[4].mxu1 }
 0x418   :  { %v545_v42 = vadd.f32 %v763_v41, %v456_v40  ;;  %v539_v43 = vpop.f32.mrb[5].mxu1 }
 0x419   :  { %v540_v44 = vadd.f32 %v539_v43, %v456_v40 }
 0x41a   :  { %549 = vst [vmem:[#allocation14 + $0x8] sm:$0xff] %v545_v42 }
 0x41b   :  { %548 = vst [vmem:[#allocation14] sm:$0xff] %v540_v44 }
 0x41c   :  { %1120 = shalt.err (!%p1117_p6)
}
 0x41d   :  { %s1121_s9 = scalar_lea.hbm %s1380_s7, 256 }
 0x41e   :  { %p1122_p7 = scmp.ne.s32.totalorder %s1380_s7, %s1121_s9  ;;  %p1125_p8 = scmp.lt.u32.totalorder %s1121_s9, %s1380_s7 }
 0x420   :  { %p1127_p9 = pnand %p1125_p8, %p1122_p7 }
 0x422   :  { %1130 = shalt.err (!%p1127_p9)
}
 0x423   :  { %565 = dma.vmem_to_hbm [thread:$0]  %s560_s4, 256, %s1380_s7, [#allocation4], %s1145_s21, %s1145_s21, %s1146_s22  }
 0x424   :  { %1139 = dma.done.wait [#allocation4], 256  }
 0x425   :  { %1140 = vsyncadd [#allocation4], 4294967040 }
 0x426   :  { %1141 = dma.done.wait [#allocation16], 512  }
 0x427   :  { %1142 = vsyncadd [#allocation16], 4294966784 }
 0x428   :  { %599 = vsyncpa [#allocation3], 1 }
 0x429   :  { %600 = vsyncpa [#allocation6], 1 }
 0x42a   :  { %601 = vsyncpa [#allocation9], 1 }
 0x42b   :  { %602 = vsyncpa [#allocation12], 1 }
 0x42c   :  { %603 = vsyncpa [#allocation4], 1 }
 0x42d   :  { %604 = vsyncpa [#allocation16], 1 }

</bundles_post_ra>
